<compile_context>
chip_gen: v5e
topology: v5e:2x2
jax: 0.10.0
libtpu: 0.0.40
codegen_flags: <defaults>
</compile_context>

<pallas_src>
import functools

import jax
import jax.numpy as jnp
import numpy as np
from jax.experimental import pallas as pl
from jax.experimental.pallas import tpu as pltpu

KSIZE = 7
PAD = (KSIZE - 1) // 2  # 3


def _spatial_gate_kernel(x_ref, w1_ref, mask_ref, wsp_ref, bnb_ref,
                         out_ref, pad_ref, *, H, W):
    # x_ref:    (NB, C, HW)        VMEM, lane-dense (HW on lanes, C on sublanes)
    # w1_ref:   (8, C)             VMEM, row 0 = 1x1 conv weight, rows 1..7 zero
    # mask_ref: (8, HW)            VMEM f32, rows 0..6 = column mask per dj
    # wsp_ref:  (49,)              SMEM f32, 7x7 channel-0 weights * bn_a (flat [kh, kw])
    # bnb_ref:  (1,)               SMEM f32, folded BatchNorm offset bn_b
    # out_ref:  (NB, C, HW)        VMEM
    # pad_ref:  (NB, HW + 2*base)  VMEM scratch: per-image flat B1 with a zero halo
    NB = x_ref.shape[0]
    HW = H * W
    base = PAD * W + PAD

    # Zero only the halo (interior rows are fully overwritten below).  Re-zeroing
    # every step (instead of a program_id == 0 guard) is two tiny stores and stays
    # correct when the "parallel" grid axis is sharded across TensorCores, since
    # each core owns its own scratch instance.
    pad_ref[:, :base] = jnp.zeros((NB, base), jnp.float32)
    pad_ref[:, base + HW:] = jnp.zeros((NB, base), jnp.float32)

    w1 = w1_ref[...]                                        # (8, C)

    # 1x1 conv C -> 1 on the MXU, one image at a time; each result lands on
    # sublane b of the zero-haloed flat plane so all later vector work is
    # (NB, HW)-dense.  (B1 == B2 in torch => D1 == B1, D2 == 0.)
    for b in range(NB):                                     # NB is a small static constant
        b1 = jnp.dot(w1, x_ref[b],
                     preferred_element_type=jnp.float32)[0:1, :]
        pad_ref[b:b + 1, base:base + HW] = b1

    # 7x7 conv (2 -> 1 channels, padding 3, no bias) over all NB images at once.
    # Only the 49 channel-0 taps contribute (the D2 input plane is identically
    # zero).  Tap weights already carry bn_a; the per-dj column mask is a single
    # float multiply hoisted out of the di loop; the zero halo absorbs row overflow.
    acc = jnp.zeros((NB, HW), jnp.float32)
    for dj in range(KSIZE):
        part = jnp.zeros((NB, HW), jnp.float32)
        for di in range(KSIZE):
            off = (di - PAD) * W + (dj - PAD)
            tap = wsp_ref[di * KSIZE + dj]
            part = part + tap * pad_ref[:, base + off:base + off + HW]
        acc = acc + part * mask_ref[dj:dj + 1, :]

    # Inference BatchNorm folded to a*x + b (a folded into the taps above).
    # TODO(synk): BN uses fixed (running) stats, not training-mode batch stats.
    scale = jax.nn.sigmoid(acc + bnb_ref[0])                # (NB, HW), on the EUP

    # Gating store stays per-image: row b of scale broadcasts over the C sublanes.
    for b in range(NB):
        out_ref[b] = (x_ref[b] * scale[b:b + 1, :]).astype(out_ref.dtype)


def _vmem_capacity_bytes():
    """Physical VMEM of the local TPU; conservative 64 MiB (v7x) fallback."""
    try:
        cap = getattr(pltpu.get_tpu_info(), "vmem_capacity_bytes", None)
        if cap:
            return int(cap)
    except Exception:
        pass
    return 64 << 20


def _pick_block_batch(n, per_image_bytes, target_block_bytes, max_nb=16):
    """Images per grid step: fill ~target_block_bytes, cap the static unroll of
    the per-image matmul/gating loops at max_nb, and keep >= 2 grid steps when
    n > 1 so both v7x TensorCores get work (harmless on single-TC v5e/v6e)."""
    nb = max(1, min(n, max_nb, target_block_bytes // max(per_image_bytes, 1)))
    if n > 1:
        nb = min(nb, -(-n // 2))
    return int(nb)


@jax.jit
def spatial_gate(x_nchw, w1_vec, wsp, bn_ab):
    """x_nchw: (N, C, H, W) f32/bf16; w1_vec: (C,); wsp: (2, 7, 7); bn_ab: (2,)."""
    N, C, H, W = x_nchw.shape
    HW = H * W
    base = PAD * W + PAD
    itemsize = np.dtype(x_nchw.dtype).itemsize

    # Free reshape (merges contiguous minor dims); no transpose over HBM.
    x = x_nchw.reshape(N, C, HW)

    vmem_cap = _vmem_capacity_bytes()
    target_block = min(8 << 20, vmem_cap // 8)
    nb = _pick_block_batch(N, C * HW * itemsize, target_block)

    # No divisor requirement: zero-pad the batch to a multiple of nb; the tail
    # images compute throwaway results that are sliced off below.
    n_pad = -(-N // nb) * nb
    if n_pad != N:
        x = jnp.pad(x, ((0, n_pad - N), (0, 0), (0, 0)))

    # 1x1 conv weight padded to 8 sublane rows -> aligned MXU lhs operand.
    w1 = jnp.zeros((8, C), x.dtype).at[0].set(w1_vec.astype(x.dtype))
    # Only channel 0 of the 7x7 weight can contribute (channel 1 convolves the
    # all-zero D2 plane); fold the BN scale bn_a into the 49 taps.
    wsp_c0 = (wsp[0].reshape(KSIZE * KSIZE) * bn_ab[0]).astype(jnp.float32)
    bn_b = bn_ab[1:2].astype(jnp.float32)

    # Precomputed float column-validity masks, one row per horizontal offset dj
    # (padded to 8 sublane rows, constant-folded at trace time).
    col = np.arange(HW, dtype=np.int64) % W
    mask_np = np.zeros((8, HW), np.float32)
    for dj in range(KSIZE):
        mask_np[dj] = ((col + dj - PAD >= 0) & (col + dj - PAD < W))
    mask = jnp.asarray(mask_np)

    # VMEM budget: double-buffered in + out blocks, the flat-halo scratch, the
    # small resident inputs, plus slack -- capped below physical VMEM.
    block_bytes = nb * C * HW * itemsize
    scratch_bytes = nb * (HW + 2 * base) * 4
    aux_bytes = 8 * C * itemsize + 8 * HW * 4
    need = 4 * block_bytes + 2 * scratch_bytes + 2 * aux_bytes + (2 << 20)
    vmem_limit = int(min(max(need, 16 << 20), max(vmem_cap - (16 << 20), 32 << 20)))

    kernel = functools.partial(_spatial_gate_kernel, H=H, W=W)

    # TODO(synk): very large feature maps (a single image over ~4-8 MiB) should
    # add a second grid axis tiling H with a 3-row halo so blocks keep fitting
    # VMEM; not needed at these shapes.
    out = pl.pallas_call(
        kernel,
        out_shape=jax.ShapeDtypeStruct((n_pad, C, HW), x.dtype),
        grid_spec=pltpu.PrefetchScalarGridSpec(
            num_scalar_prefetch=0,
            grid=(n_pad // nb,),
            in_specs=[
                pl.BlockSpec((nb, C, HW), lambda n: (n, 0, 0)),
                pl.BlockSpec((8, C), lambda n: (0, 0)),
                pl.BlockSpec((8, HW), lambda n: (0, 0)),
                pl.BlockSpec(memory_space=pltpu.MemorySpace.SMEM),
                pl.BlockSpec(memory_space=pltpu.MemorySpace.SMEM),
            ],
            out_specs=pl.BlockSpec((nb, C, HW), lambda n: (n, 0, 0)),
            scratch_shapes=[pltpu.VMEM((nb, HW + 2 * base), jnp.float32)],
        ),
        compiler_params=pltpu.CompilerParams(
            dimension_semantics=("parallel",),
            vmem_limit_bytes=vmem_limit,
        ),
    )(x, w1, mask, wsp_c0, bn_b)

    return out[:N].reshape(N, C, H, W)


def _reference(x_nchw, w1_vec, wsp, bn_ab):
    """Pure-JAX reference of the torch forward pass (full 2-channel conv)."""
    N, C, H, W = x_nchw.shape
    xf = x_nchw.astype(jnp.float32)
    b1 = jnp.einsum("nchw,c->nhw", xf, w1_vec)
    b2 = jnp.einsum("nchw,c->nhw", xf, w1_vec)   # conv1 applied twice, as in torch
    d1 = (b1 + b2) / 2.0
    d2 = (b1 - b2) / 2.0
    xc = jnp.stack([d1, d2], axis=1)             # (N, 2, H, W)
    padded = jnp.pad(xc, ((0, 0), (0, 0), (PAD, PAD), (PAD, PAD)))
    acc = jnp.zeros((N, H, W), jnp.float32)
    for c in range(2):
        for i in range(KSIZE):
            for j in range(KSIZE):
                acc = acc + wsp[c, i, j] * padded[:, c, i:i + H, j:j + W]
    y = acc * bn_ab[0] + bn_ab[1]
    return xf * jax.nn.sigmoid(y)[:, None, :, :]


if __name__ == "__main__":
    key = jax.random.PRNGKey(0)
    k_x, k_w1, k_wsp = jax.random.split(key, 3)

    C, H, W = 64, 16, 16   # C=64 selects self.conv1 in the torch module

    # conv1: nn.Conv2d(64, 1, kernel_size=1, bias=False) -> weight (1, 64, 1, 1) == (C,)
    w1_vec = jax.random.normal(k_w1, (C,), dtype=jnp.float32) * 0.1
    # spatial conv: nn.Conv2d(2, 1, kernel_size=7, padding=3, bias=False) -> (1, 2, 7, 7)
    wsp = jax.random.normal(k_wsp, (2, KSIZE, KSIZE), dtype=jnp.float32) * 0.05

    # BatchNorm2d(1, eps=1e-5, affine=True) with inference stats, folded to a*x + b.
    gamma, beta = jnp.float32(1.2), jnp.float32(0.1)
    running_mean, running_var, eps = jnp.float32(0.05), jnp.float32(0.8), 1e-5
    bn_a = gamma / jnp.sqrt(running_var + eps)
    bn_b = beta - running_mean * bn_a
    bn_ab = jnp.stack([bn_a, bn_b]).astype(jnp.float32)

    x8 = jax.random.normal(k_x, (8, C, H, W), dtype=jnp.float32)

    # f32: N=2 (NB=1 path), N=8 (sublane-batched NB=4 path), N=3 (padded tail).
    for n in (2, 8, 3):
        x = x8[:n]
        out = jax.block_until_ready(spatial_gate(x, w1_vec, wsp, bn_ab))
        ref = _reference(x, w1_vec, wsp, bn_ab)
        # Slightly relaxed atol/rtol: the 1x1 conv runs on the MXU's multi-pass
        # f32 path instead of exact VPU adds.
        np.testing.assert_allclose(np.asarray(out), np.asarray(ref),
                                   rtol=2e-4, atol=2e-5)
        assert out.shape == (n, C, H, W) and out.dtype == jnp.float32

    # bf16 I/O smoke test (internal math stays f32; loose tolerance for bf16 rounding).
    x_bf16 = x8.astype(jnp.bfloat16)
    out_bf16 = jax.block_until_ready(spatial_gate(x_bf16, w1_vec, wsp, bn_ab))
    ref_bf16 = _reference(x_bf16, w1_vec, wsp, bn_ab)
    np.testing.assert_allclose(np.asarray(out_bf16.astype(jnp.float32)),
                               np.asarray(ref_bf16), rtol=5e-2, atol=5e-2)
    assert out_bf16.shape == (8, C, H, W) and out_bf16.dtype == jnp.bfloat16

    print("KERNEL_OK")
</pallas_src>

<mosaic_0001>
module attributes {stable_mosaic.version = 11 : i64} {
  func.func @_spatial_gate_kernel(%arg0: i32, %arg1: memref<1x64x256xf32, #tpu.memory_space<vmem>>, %arg2: memref<8x64xf32, #tpu.memory_space<vmem>>, %arg3: memref<8x256xf32, #tpu.memory_space<vmem>>, %arg4: memref<49xf32, #tpu.memory_space<smem>>, %arg5: memref<1xf32, #tpu.memory_space<smem>>, %arg6: memref<1x64x256xf32, #tpu.memory_space<vmem>>, %arg7: memref<1x358xf32, #tpu.memory_space<vmem>>) attributes {dimension_semantics = [#tpu.dimension_semantics<parallel>], iteration_bounds = array<i64: 2>, scalar_prefetch = 0 : i64, scratch_operands = 1 : i64, tpu.core_type = #tpu.core_type<tc>, window_params = [{transform_indices = @transform_0, window_bounds = array<i64: 1, 64, 256>}, {pipeline_mode = #tpu.pipeline_mode<synchronous>, transform_indices = @transform_1, window_bounds = array<i64: 8, 64>}, {pipeline_mode = #tpu.pipeline_mode<synchronous>, transform_indices = @transform_2, window_bounds = array<i64: 8, 256>}, {transform_indices = @transform_3, window_bounds = array<i64: 49>}, {transform_indices = @transform_4, window_bounds = array<i64: 1>}, {transform_indices = @transform_5, window_bounds = array<i64: 1, 64, 256>}]} {
    %cst = arith.constant 0.000000e+00 : f32
    %0 = vector.broadcast %cst : f32 to vector<1x51xf32>
    %c0 = arith.constant 0 : index
    %c0_0 = arith.constant 0 : index
    %1 = vector.load %arg7[%c0, %c0_0] : memref<1x358xf32, #tpu.memory_space<vmem>>, vector<1x51xf32>
    tpu.vector_store %arg7[%c0, %c0_0], %0 {strides = array<i32>} : memref<1x358xf32, #tpu.memory_space<vmem>>, vector<1x51xf32>,
    %cst_1 = arith.constant 0.000000e+00 : f32
    %2 = vector.broadcast %cst_1 : f32 to vector<1x51xf32>
    %c0_2 = arith.constant 0 : index
    %c307 = arith.constant 307 : index
    %3 = vector.load %arg7[%c0_2, %c307] : memref<1x358xf32, #tpu.memory_space<vmem>>, vector<1x51xf32>
    tpu.vector_store %arg7[%c0_2, %c307], %2 {strides = array<i32>} : memref<1x358xf32, #tpu.memory_space<vmem>>, vector<1x51xf32>,
    %c0_3 = arith.constant 0 : index
    %c0_4 = arith.constant 0 : index
    %4 = vector.load %arg2[%c0_3, %c0_4] : memref<8x64xf32, #tpu.memory_space<vmem>>, vector<8x64xf32>
    %c0_5 = arith.constant 0 : index
    %c0_6 = arith.constant 0 : index
    %c0_7 = arith.constant 0 : index
    %5 = vector.load %arg1[%c0_5, %c0_6, %c0_7] : memref<1x64x256xf32, #tpu.memory_space<vmem>>, vector<1x64x256xf32>
    %6 = vector.shape_cast %5 : vector<1x64x256xf32> to vector<64x256xf32>
    %cst_8 = arith.constant dense<0.000000e+00> : vector<8x256xf32>
    %7 = tpu.matmul %4, %6, %cst_8 {dimension_numbers = #tpu.dot_dimension_numbers<[1], [0], [0], [1], [0, 0, 1, 1], [], []>} : vector<8x64xf32>, vector<64x256xf32>, vector<8x256xf32> -> vector<8x256xf32>
    %8 = vector.extract_strided_slice %7 {offsets = [0, 0], sizes = [1, 256], strides = [1, 1]} : vector<8x256xf32> to vector<1x256xf32>
    %c0_9 = arith.constant 0 : index
    %c51 = arith.constant 51 : index
    %9 = vector.load %arg7[%c0_9, %c51] : memref<1x358xf32, #tpu.memory_space<vmem>>, vector<1x256xf32>
    tpu.vector_store %arg7[%c0_9, %c51], %8 {strides = array<i32>} : memref<1x358xf32, #tpu.memory_space<vmem>>, vector<1x256xf32>,
    %cst_10 = arith.constant 0.000000e+00 : f32
    %10 = vector.broadcast %cst_10 : f32 to vector<1x256xf32>
    %cst_11 = arith.constant 0.000000e+00 : f32
    %11 = vector.broadcast %cst_11 : f32 to vector<1x256xf32>
    %c0_12 = arith.constant 0 : index
    %12 = memref.load %arg4[%c0_12] : memref<49xf32, #tpu.memory_space<smem>>
    %c0_13 = arith.constant 0 : index
    %c0_14 = arith.constant 0 : index
    %13 = vector.load %arg7[%c0_13, %c0_14] : memref<1x358xf32, #tpu.memory_space<vmem>>, vector<1x256xf32>
    %14 = vector.broadcast %12 : f32 to vector<1x256xf32>
    %15 = arith.mulf %14, %13 : vector<1x256xf32>
    %16 = arith.addf %11, %15 : vector<1x256xf32>
    %c7 = arith.constant 7 : index
    %17 = memref.load %arg4[%c7] : memref<49xf32, #tpu.memory_space<smem>>
    %c0_15 = arith.constant 0 : index
    %c16 = arith.constant 16 : index
    %18 = vector.load %arg7[%c0_15, %c16] : memref<1x358xf32, #tpu.memory_space<vmem>>, vector<1x256xf32>
    %19 = vector.broadcast %17 : f32 to vector<1x256xf32>
    %20 = arith.mulf %19, %18 : vector<1x256xf32>
    %21 = arith.addf %16, %20 : vector<1x256xf32>
    %c14 = arith.constant 14 : index
    %22 = memref.load %arg4[%c14] : memref<49xf32, #tpu.memory_space<smem>>
    %c0_16 = arith.constant 0 : index
    %c32 = arith.constant 32 : index
    %23 = vector.load %arg7[%c0_16, %c32] : memref<1x358xf32, #tpu.memory_space<vmem>>, vector<1x256xf32>
    %24 = vector.broadcast %22 : f32 to vector<1x256xf32>
    %25 = arith.mulf %24, %23 : vector<1x256xf32>
    %26 = arith.addf %21, %25 : vector<1x256xf32>
    %c21 = arith.constant 21 : index
    %27 = memref.load %arg4[%c21] : memref<49xf32, #tpu.memory_space<smem>>
    %c0_17 = arith.constant 0 : index
    %c48 = arith.constant 48 : index
    %28 = vector.load %arg7[%c0_17, %c48] : memref<1x358xf32, #tpu.memory_space<vmem>>, vector<1x256xf32>
    %29 = vector.broadcast %27 : f32 to vector<1x256xf32>
    %30 = arith.mulf %29, %28 : vector<1x256xf32>
    %31 = arith.addf %26, %30 : vector<1x256xf32>
    %c28 = arith.constant 28 : index
    %32 = memref.load %arg4[%c28] : memref<49xf32, #tpu.memory_space<smem>>
    %c0_18 = arith.constant 0 : index
    %c64 = arith.constant 64 : index
    %33 = vector.load %arg7[%c0_18, %c64] : memref<1x358xf32, #tpu.memory_space<vmem>>, vector<1x256xf32>
    %34 = vector.broadcast %32 : f32 to vector<1x256xf32>
    %35 = arith.mulf %34, %33 : vector<1x256xf32>
    %36 = arith.addf %31, %35 : vector<1x256xf32>
    %c35 = arith.constant 35 : index
    %37 = memref.load %arg4[%c35] : memref<49xf32, #tpu.memory_space<smem>>
    %c0_19 = arith.constant 0 : index
    %c80 = arith.constant 80 : index
    %38 = vector.load %arg7[%c0_19, %c80] : memref<1x358xf32, #tpu.memory_space<vmem>>, vector<1x256xf32>
    %39 = vector.broadcast %37 : f32 to vector<1x256xf32>
    %40 = arith.mulf %39, %38 : vector<1x256xf32>
    %41 = arith.addf %36, %40 : vector<1x256xf32>
    %c42 = arith.constant 42 : index
    %42 = memref.load %arg4[%c42] : memref<49xf32, #tpu.memory_space<smem>>
    %c0_20 = arith.constant 0 : index
    %c96 = arith.constant 96 : index
    %43 = vector.load %arg7[%c0_20, %c96] : memref<1x358xf32, #tpu.memory_space<vmem>>, vector<1x256xf32>
    %44 = vector.broadcast %42 : f32 to vector<1x256xf32>
    %45 = arith.mulf %44, %43 : vector<1x256xf32>
    %46 = arith.addf %41, %45 : vector<1x256xf32>
    %c0_21 = arith.constant 0 : index
    %c0_22 = arith.constant 0 : index
    %47 = vector.load %arg3[%c0_21, %c0_22] : memref<8x256xf32, #tpu.memory_space<vmem>>, vector<1x256xf32>
    %48 = arith.mulf %46, %47 : vector<1x256xf32>
    %49 = arith.addf %10, %48 : vector<1x256xf32>
    %cst_23 = arith.constant 0.000000e+00 : f32
    %50 = vector.broadcast %cst_23 : f32 to vector<1x256xf32>
    %c1 = arith.constant 1 : index
    %51 = memref.load %arg4[%c1] : memref<49xf32, #tpu.memory_space<smem>>
    %c0_24 = arith.constant 0 : index
    %c1_25 = arith.constant 1 : index
    %52 = vector.load %arg7[%c0_24, %c1_25] : memref<1x358xf32, #tpu.memory_space<vmem>>, vector<1x256xf32>
    %53 = vector.broadcast %51 : f32 to vector<1x256xf32>
    %54 = arith.mulf %53, %52 : vector<1x256xf32>
    %55 = arith.addf %50, %54 : vector<1x256xf32>
    %c8 = arith.constant 8 : index
    %56 = memref.load %arg4[%c8] : memref<49xf32, #tpu.memory_space<smem>>
    %c0_26 = arith.constant 0 : index
    %c17 = arith.constant 17 : index
    %57 = vector.load %arg7[%c0_26, %c17] : memref<1x358xf32, #tpu.memory_space<vmem>>, vector<1x256xf32>
    %58 = vector.broadcast %56 : f32 to vector<1x256xf32>
    %59 = arith.mulf %58, %57 : vector<1x256xf32>
    %60 = arith.addf %55, %59 : vector<1x256xf32>
    %c15 = arith.constant 15 : index
    %61 = memref.load %arg4[%c15] : memref<49xf32, #tpu.memory_space<smem>>
    %c0_27 = arith.constant 0 : index
    %c33 = arith.constant 33 : index
    %62 = vector.load %arg7[%c0_27, %c33] : memref<1x358xf32, #tpu.memory_space<vmem>>, vector<1x256xf32>
    %63 = vector.broadcast %61 : f32 to vector<1x256xf32>
    %64 = arith.mulf %63, %62 : vector<1x256xf32>
    %65 = arith.addf %60, %64 : vector<1x256xf32>
    %c22 = arith.constant 22 : index
    %66 = memref.load %arg4[%c22] : memref<49xf32, #tpu.memory_space<smem>>
    %c0_28 = arith.constant 0 : index
    %c49 = arith.constant 49 : index
    %67 = vector.load %arg7[%c0_28, %c49] : memref<1x358xf32, #tpu.memory_space<vmem>>, vector<1x256xf32>
    %68 = vector.broadcast %66 : f32 to vector<1x256xf32>
    %69 = arith.mulf %68, %67 : vector<1x256xf32>
    %70 = arith.addf %65, %69 : vector<1x256xf32>
    %c29 = arith.constant 29 : index
    %71 = memref.load %arg4[%c29] : memref<49xf32, #tpu.memory_space<smem>>
    %c0_29 = arith.constant 0 : index
    %c65 = arith.constant 65 : index
    %72 = vector.load %arg7[%c0_29, %c65] : memref<1x358xf32, #tpu.memory_space<vmem>>, vector<1x256xf32>
    %73 = vector.broadcast %71 : f32 to vector<1x256xf32>
    %74 = arith.mulf %73, %72 : vector<1x256xf32>
    %75 = arith.addf %70, %74 : vector<1x256xf32>
    %c36 = arith.constant 36 : index
    %76 = memref.load %arg4[%c36] : memref<49xf32, #tpu.memory_space<smem>>
    %c0_30 = arith.constant 0 : index
    %c81 = arith.constant 81 : index
    %77 = vector.load %arg7[%c0_30, %c81] : memref<1x358xf32, #tpu.memory_space<vmem>>, vector<1x256xf32>
    %78 = vector.broadcast %76 : f32 to vector<1x256xf32>
    %79 = arith.mulf %78, %77 : vector<1x256xf32>
    %80 = arith.addf %75, %79 : vector<1x256xf32>
    %c43 = arith.constant 43 : index
    %81 = memref.load %arg4[%c43] : memref<49xf32, #tpu.memory_space<smem>>
    %c0_31 = arith.constant 0 : index
    %c97 = arith.constant 97 : index
    %82 = vector.load %arg7[%c0_31, %c97] : memref<1x358xf32, #tpu.memory_space<vmem>>, vector<1x256xf32>
    %83 = vector.broadcast %81 : f32 to vector<1x256xf32>
    %84 = arith.mulf %83, %82 : vector<1x256xf32>
    %85 = arith.addf %80, %84 : vector<1x256xf32>
    %c1_32 = arith.constant 1 : index
    %c0_33 = arith.constant 0 : index
    %86 = vector.load %arg3[%c1_32, %c0_33] : memref<8x256xf32, #tpu.memory_space<vmem>>, vector<1x256xf32>
    %87 = arith.mulf %85, %86 : vector<1x256xf32>
    %88 = arith.addf %49, %87 : vector<1x256xf32>
    %cst_34 = arith.constant 0.000000e+00 : f32
    %89 = vector.broadcast %cst_34 : f32 to vector<1x256xf32>
    %c2 = arith.constant 2 : index
    %90 = memref.load %arg4[%c2] : memref<49xf32, #tpu.memory_space<smem>>
    %c0_35 = arith.constant 0 : index
    %c2_36 = arith.constant 2 : index
    %91 = vector.load %arg7[%c0_35, %c2_36] : memref<1x358xf32, #tpu.memory_space<vmem>>, vector<1x256xf32>
    %92 = vector.broadcast %90 : f32 to vector<1x256xf32>
    %93 = arith.mulf %92, %91 : vector<1x256xf32>
    %94 = arith.addf %89, %93 : vector<1x256xf32>
    %c9 = arith.constant 9 : index
    %95 = memref.load %arg4[%c9] : memref<49xf32, #tpu.memory_space<smem>>
    %c0_37 = arith.constant 0 : index
    %c18 = arith.constant 18 : index
    %96 = vector.load %arg7[%c0_37, %c18] : memref<1x358xf32, #tpu.memory_space<vmem>>, vector<1x256xf32>
    %97 = vector.broadcast %95 : f32 to vector<1x256xf32>
    %98 = arith.mulf %97, %96 : vector<1x256xf32>
    %99 = arith.addf %94, %98 : vector<1x256xf32>
    %c16_38 = arith.constant 16 : index
    %100 = memref.load %arg4[%c16_38] : memref<49xf32, #tpu.memory_space<smem>>
    %c0_39 = arith.constant 0 : index
    %c34 = arith.constant 34 : index
    %101 = vector.load %arg7[%c0_39, %c34] : memref<1x358xf32, #tpu.memory_space<vmem>>, vector<1x256xf32>
    %102 = vector.broadcast %100 : f32 to vector<1x256xf32>
    %103 = arith.mulf %102, %101 : vector<1x256xf32>
    %104 = arith.addf %99, %103 : vector<1x256xf32>
    %c23 = arith.constant 23 : index
    %105 = memref.load %arg4[%c23] : memref<49xf32, #tpu.memory_space<smem>>
    %c0_40 = arith.constant 0 : index
    %c50 = arith.constant 50 : index
    %106 = vector.load %arg7[%c0_40, %c50] : memref<1x358xf32, #tpu.memory_space<vmem>>, vector<1x256xf32>
    %107 = vector.broadcast %105 : f32 to vector<1x256xf32>
    %108 = arith.mulf %107, %106 : vector<1x256xf32>
    %109 = arith.addf %104, %108 : vector<1x256xf32>
    %c30 = arith.constant 30 : index
    %110 = memref.load %arg4[%c30] : memref<49xf32, #tpu.memory_space<smem>>
    %c0_41 = arith.constant 0 : index
    %c66 = arith.constant 66 : index
    %111 = vector.load %arg7[%c0_41, %c66] : memref<1x358xf32, #tpu.memory_space<vmem>>, vector<1x256xf32>
    %112 = vector.broadcast %110 : f32 to vector<1x256xf32>
    %113 = arith.mulf %112, %111 : vector<1x256xf32>
    %114 = arith.addf %109, %113 : vector<1x256xf32>
    %c37 = arith.constant 37 : index
    %115 = memref.load %arg4[%c37] : memref<49xf32, #tpu.memory_space<smem>>
    %c0_42 = arith.constant 0 : index
    %c82 = arith.constant 82 : index
    %116 = vector.load %arg7[%c0_42, %c82] : memref<1x358xf32, #tpu.memory_space<vmem>>, vector<1x256xf32>
    %117 = vector.broadcast %115 : f32 to vector<1x256xf32>
    %118 = arith.mulf %117, %116 : vector<1x256xf32>
    %119 = arith.addf %114, %118 : vector<1x256xf32>
    %c44 = arith.constant 44 : index
    %120 = memref.load %arg4[%c44] : memref<49xf32, #tpu.memory_space<smem>>
    %c0_43 = arith.constant 0 : index
    %c98 = arith.constant 98 : index
    %121 = vector.load %arg7[%c0_43, %c98] : memref<1x358xf32, #tpu.memory_space<vmem>>, vector<1x256xf32>
    %122 = vector.broadcast %120 : f32 to vector<1x256xf32>
    %123 = arith.mulf %122, %121 : vector<1x256xf32>
    %124 = arith.addf %119, %123 : vector<1x256xf32>
    %c2_44 = arith.constant 2 : index
    %c0_45 = arith.constant 0 : index
    %125 = vector.load %arg3[%c2_44, %c0_45] : memref<8x256xf32, #tpu.memory_space<vmem>>, vector<1x256xf32>
    %126 = arith.mulf %124, %125 : vector<1x256xf32>
    %127 = arith.addf %88, %126 : vector<1x256xf32>
    %cst_46 = arith.constant 0.000000e+00 : f32
    %128 = vector.broadcast %cst_46 : f32 to vector<1x256xf32>
    %c3 = arith.constant 3 : index
    %129 = memref.load %arg4[%c3] : memref<49xf32, #tpu.memory_space<smem>>
    %c0_47 = arith.constant 0 : index
    %c3_48 = arith.constant 3 : index
    %130 = vector.load %arg7[%c0_47, %c3_48] : memref<1x358xf32, #tpu.memory_space<vmem>>, vector<1x256xf32>
    %131 = vector.broadcast %129 : f32 to vector<1x256xf32>
    %132 = arith.mulf %131, %130 : vector<1x256xf32>
    %133 = arith.addf %128, %132 : vector<1x256xf32>
    %c10 = arith.constant 10 : index
    %134 = memref.load %arg4[%c10] : memref<49xf32, #tpu.memory_space<smem>>
    %c0_49 = arith.constant 0 : index
    %c19 = arith.constant 19 : index
    %135 = vector.load %arg7[%c0_49, %c19] : memref<1x358xf32, #tpu.memory_space<vmem>>, vector<1x256xf32>
    %136 = vector.broadcast %134 : f32 to vector<1x256xf32>
    %137 = arith.mulf %136, %135 : vector<1x256xf32>
    %138 = arith.addf %133, %137 : vector<1x256xf32>
    %c17_50 = arith.constant 17 : index
    %139 = memref.load %arg4[%c17_50] : memref<49xf32, #tpu.memory_space<smem>>
    %c0_51 = arith.constant 0 : index
    %c35_52 = arith.constant 35 : index
    %140 = vector.load %arg7[%c0_51, %c35_52] : memref<1x358xf32, #tpu.memory_space<vmem>>, vector<1x256xf32>
    %141 = vector.broadcast %139 : f32 to vector<1x256xf32>
    %142 = arith.mulf %141, %140 : vector<1x256xf32>
    %143 = arith.addf %138, %142 : vector<1x256xf32>
    %c24 = arith.constant 24 : index
    %144 = memref.load %arg4[%c24] : memref<49xf32, #tpu.memory_space<smem>>
    %c0_53 = arith.constant 0 : index
    %c51_54 = arith.constant 51 : index
    %145 = vector.load %arg7[%c0_53, %c51_54] : memref<1x358xf32, #tpu.memory_space<vmem>>, vector<1x256xf32>
    %146 = vector.broadcast %144 : f32 to vector<1x256xf32>
    %147 = arith.mulf %146, %145 : vector<1x256xf32>
    %148 = arith.addf %143, %147 : vector<1x256xf32>
    %c31 = arith.constant 31 : index
    %149 = memref.load %arg4[%c31] : memref<49xf32, #tpu.memory_space<smem>>
    %c0_55 = arith.constant 0 : index
    %c67 = arith.constant 67 : index
    %150 = vector.load %arg7[%c0_55, %c67] : memref<1x358xf32, #tpu.memory_space<vmem>>, vector<1x256xf32>
    %151 = vector.broadcast %149 : f32 to vector<1x256xf32>
    %152 = arith.mulf %151, %150 : vector<1x256xf32>
    %153 = arith.addf %148, %152 : vector<1x256xf32>
    %c38 = arith.constant 38 : index
    %154 = memref.load %arg4[%c38] : memref<49xf32, #tpu.memory_space<smem>>
    %c0_56 = arith.constant 0 : index
    %c83 = arith.constant 83 : index
    %155 = vector.load %arg7[%c0_56, %c83] : memref<1x358xf32, #tpu.memory_space<vmem>>, vector<1x256xf32>
    %156 = vector.broadcast %154 : f32 to vector<1x256xf32>
    %157 = arith.mulf %156, %155 : vector<1x256xf32>
    %158 = arith.addf %153, %157 : vector<1x256xf32>
    %c45 = arith.constant 45 : index
    %159 = memref.load %arg4[%c45] : memref<49xf32, #tpu.memory_space<smem>>
    %c0_57 = arith.constant 0 : index
    %c99 = arith.constant 99 : index
    %160 = vector.load %arg7[%c0_57, %c99] : memref<1x358xf32, #tpu.memory_space<vmem>>, vector<1x256xf32>
    %161 = vector.broadcast %159 : f32 to vector<1x256xf32>
    %162 = arith.mulf %161, %160 : vector<1x256xf32>
    %163 = arith.addf %158, %162 : vector<1x256xf32>
    %c3_58 = arith.constant 3 : index
    %c0_59 = arith.constant 0 : index
    %164 = vector.load %arg3[%c3_58, %c0_59] : memref<8x256xf32, #tpu.memory_space<vmem>>, vector<1x256xf32>
    %165 = arith.mulf %163, %164 : vector<1x256xf32>
    %166 = arith.addf %127, %165 : vector<1x256xf32>
    %cst_60 = arith.constant 0.000000e+00 : f32
    %167 = vector.broadcast %cst_60 : f32 to vector<1x256xf32>
    %c4 = arith.constant 4 : index
    %168 = memref.load %arg4[%c4] : memref<49xf32, #tpu.memory_space<smem>>
    %c0_61 = arith.constant 0 : index
    %c4_62 = arith.constant 4 : index
    %169 = vector.load %arg7[%c0_61, %c4_62] : memref<1x358xf32, #tpu.memory_space<vmem>>, vector<1x256xf32>
    %170 = vector.broadcast %168 : f32 to vector<1x256xf32>
    %171 = arith.mulf %170, %169 : vector<1x256xf32>
    %172 = arith.addf %167, %171 : vector<1x256xf32>
    %c11 = arith.constant 11 : index
    %173 = memref.load %arg4[%c11] : memref<49xf32, #tpu.memory_space<smem>>
    %c0_63 = arith.constant 0 : index
    %c20 = arith.constant 20 : index
    %174 = vector.load %arg7[%c0_63, %c20] : memref<1x358xf32, #tpu.memory_space<vmem>>, vector<1x256xf32>
    %175 = vector.broadcast %173 : f32 to vector<1x256xf32>
    %176 = arith.mulf %175, %174 : vector<1x256xf32>
    %177 = arith.addf %172, %176 : vector<1x256xf32>
    %c18_64 = arith.constant 18 : index
    %178 = memref.load %arg4[%c18_64] : memref<49xf32, #tpu.memory_space<smem>>
    %c0_65 = arith.constant 0 : index
    %c36_66 = arith.constant 36 : index
    %179 = vector.load %arg7[%c0_65, %c36_66] : memref<1x358xf32, #tpu.memory_space<vmem>>, vector<1x256xf32>
    %180 = vector.broadcast %178 : f32 to vector<1x256xf32>
    %181 = arith.mulf %180, %179 : vector<1x256xf32>
    %182 = arith.addf %177, %181 : vector<1x256xf32>
    %c25 = arith.constant 25 : index
    %183 = memref.load %arg4[%c25] : memref<49xf32, #tpu.memory_space<smem>>
    %c0_67 = arith.constant 0 : index
    %c52 = arith.constant 52 : index
    %184 = vector.load %arg7[%c0_67, %c52] : memref<1x358xf32, #tpu.memory_space<vmem>>, vector<1x256xf32>
    %185 = vector.broadcast %183 : f32 to vector<1x256xf32>
    %186 = arith.mulf %185, %184 : vector<1x256xf32>
    %187 = arith.addf %182, %186 : vector<1x256xf32>
    %c32_68 = arith.constant 32 : index
    %188 = memref.load %arg4[%c32_68] : memref<49xf32, #tpu.memory_space<smem>>
    %c0_69 = arith.constant 0 : index
    %c68 = arith.constant 68 : index
    %189 = vector.load %arg7[%c0_69, %c68] : memref<1x358xf32, #tpu.memory_space<vmem>>, vector<1x256xf32>
    %190 = vector.broadcast %188 : f32 to vector<1x256xf32>
    %191 = arith.mulf %190, %189 : vector<1x256xf32>
    %192 = arith.addf %187, %191 : vector<1x256xf32>
    %c39 = arith.constant 39 : index
    %193 = memref.load %arg4[%c39] : memref<49xf32, #tpu.memory_space<smem>>
    %c0_70 = arith.constant 0 : index
    %c84 = arith.constant 84 : index
    %194 = vector.load %arg7[%c0_70, %c84] : memref<1x358xf32, #tpu.memory_space<vmem>>, vector<1x256xf32>
    %195 = vector.broadcast %193 : f32 to vector<1x256xf32>
    %196 = arith.mulf %195, %194 : vector<1x256xf32>
    %197 = arith.addf %192, %196 : vector<1x256xf32>
    %c46 = arith.constant 46 : index
    %198 = memref.load %arg4[%c46] : memref<49xf32, #tpu.memory_space<smem>>
    %c0_71 = arith.constant 0 : index
    %c100 = arith.constant 100 : index
    %199 = vector.load %arg7[%c0_71, %c100] : memref<1x358xf32, #tpu.memory_space<vmem>>, vector<1x256xf32>
    %200 = vector.broadcast %198 : f32 to vector<1x256xf32>
    %201 = arith.mulf %200, %199 : vector<1x256xf32>
    %202 = arith.addf %197, %201 : vector<1x256xf32>
    %c4_72 = arith.constant 4 : index
    %c0_73 = arith.constant 0 : index
    %203 = vector.load %arg3[%c4_72, %c0_73] : memref<8x256xf32, #tpu.memory_space<vmem>>, vector<1x256xf32>
    %204 = arith.mulf %202, %203 : vector<1x256xf32>
    %205 = arith.addf %166, %204 : vector<1x256xf32>
    %cst_74 = arith.constant 0.000000e+00 : f32
    %206 = vector.broadcast %cst_74 : f32 to vector<1x256xf32>
    %c5 = arith.constant 5 : index
    %207 = memref.load %arg4[%c5] : memref<49xf32, #tpu.memory_space<smem>>
    %c0_75 = arith.constant 0 : index
    %c5_76 = arith.constant 5 : index
    %208 = vector.load %arg7[%c0_75, %c5_76] : memref<1x358xf32, #tpu.memory_space<vmem>>, vector<1x256xf32>
    %209 = vector.broadcast %207 : f32 to vector<1x256xf32>
    %210 = arith.mulf %209, %208 : vector<1x256xf32>
    %211 = arith.addf %206, %210 : vector<1x256xf32>
    %c12 = arith.constant 12 : index
    %212 = memref.load %arg4[%c12] : memref<49xf32, #tpu.memory_space<smem>>
    %c0_77 = arith.constant 0 : index
    %c21_78 = arith.constant 21 : index
    %213 = vector.load %arg7[%c0_77, %c21_78] : memref<1x358xf32, #tpu.memory_space<vmem>>, vector<1x256xf32>
    %214 = vector.broadcast %212 : f32 to vector<1x256xf32>
    %215 = arith.mulf %214, %213 : vector<1x256xf32>
    %216 = arith.addf %211, %215 : vector<1x256xf32>
    %c19_79 = arith.constant 19 : index
    %217 = memref.load %arg4[%c19_79] : memref<49xf32, #tpu.memory_space<smem>>
    %c0_80 = arith.constant 0 : index
    %c37_81 = arith.constant 37 : index
    %218 = vector.load %arg7[%c0_80, %c37_81] : memref<1x358xf32, #tpu.memory_space<vmem>>, vector<1x256xf32>
    %219 = vector.broadcast %217 : f32 to vector<1x256xf32>
    %220 = arith.mulf %219, %218 : vector<1x256xf32>
    %221 = arith.addf %216, %220 : vector<1x256xf32>
    %c26 = arith.constant 26 : index
    %222 = memref.load %arg4[%c26] : memref<49xf32, #tpu.memory_space<smem>>
    %c0_82 = arith.constant 0 : index
    %c53 = arith.constant 53 : index
    %223 = vector.load %arg7[%c0_82, %c53] : memref<1x358xf32, #tpu.memory_space<vmem>>, vector<1x256xf32>
    %224 = vector.broadcast %222 : f32 to vector<1x256xf32>
    %225 = arith.mulf %224, %223 : vector<1x256xf32>
    %226 = arith.addf %221, %225 : vector<1x256xf32>
    %c33_83 = arith.constant 33 : index
    %227 = memref.load %arg4[%c33_83] : memref<49xf32, #tpu.memory_space<smem>>
    %c0_84 = arith.constant 0 : index
    %c69 = arith.constant 69 : index
    %228 = vector.load %arg7[%c0_84, %c69] : memref<1x358xf32, #tpu.memory_space<vmem>>, vector<1x256xf32>
    %229 = vector.broadcast %227 : f32 to vector<1x256xf32>
    %230 = arith.mulf %229, %228 : vector<1x256xf32>
    %231 = arith.addf %226, %230 : vector<1x256xf32>
    %c40 = arith.constant 40 : index
    %232 = memref.load %arg4[%c40] : memref<49xf32, #tpu.memory_space<smem>>
    %c0_85 = arith.constant 0 : index
    %c85 = arith.constant 85 : index
    %233 = vector.load %arg7[%c0_85, %c85] : memref<1x358xf32, #tpu.memory_space<vmem>>, vector<1x256xf32>
    %234 = vector.broadcast %232 : f32 to vector<1x256xf32>
    %235 = arith.mulf %234, %233 : vector<1x256xf32>
    %236 = arith.addf %231, %235 : vector<1x256xf32>
    %c47 = arith.constant 47 : index
    %237 = memref.load %arg4[%c47] : memref<49xf32, #tpu.memory_space<smem>>
    %c0_86 = arith.constant 0 : index
    %c101 = arith.constant 101 : index
    %238 = vector.load %arg7[%c0_86, %c101] : memref<1x358xf32, #tpu.memory_space<vmem>>, vector<1x256xf32>
    %239 = vector.broadcast %237 : f32 to vector<1x256xf32>
    %240 = arith.mulf %239, %238 : vector<1x256xf32>
    %241 = arith.addf %236, %240 : vector<1x256xf32>
    %c5_87 = arith.constant 5 : index
    %c0_88 = arith.constant 0 : index
    %242 = vector.load %arg3[%c5_87, %c0_88] : memref<8x256xf32, #tpu.memory_space<vmem>>, vector<1x256xf32>
    %243 = arith.mulf %241, %242 : vector<1x256xf32>
    %244 = arith.addf %205, %243 : vector<1x256xf32>
    %cst_89 = arith.constant 0.000000e+00 : f32
    %245 = vector.broadcast %cst_89 : f32 to vector<1x256xf32>
    %c6 = arith.constant 6 : index
    %246 = memref.load %arg4[%c6] : memref<49xf32, #tpu.memory_space<smem>>
    %c0_90 = arith.constant 0 : index
    %c6_91 = arith.constant 6 : index
    %247 = vector.load %arg7[%c0_90, %c6_91] : memref<1x358xf32, #tpu.memory_space<vmem>>, vector<1x256xf32>
    %248 = vector.broadcast %246 : f32 to vector<1x256xf32>
    %249 = arith.mulf %248, %247 : vector<1x256xf32>
    %250 = arith.addf %245, %249 : vector<1x256xf32>
    %c13 = arith.constant 13 : index
    %251 = memref.load %arg4[%c13] : memref<49xf32, #tpu.memory_space<smem>>
    %c0_92 = arith.constant 0 : index
    %c22_93 = arith.constant 22 : index
    %252 = vector.load %arg7[%c0_92, %c22_93] : memref<1x358xf32, #tpu.memory_space<vmem>>, vector<1x256xf32>
    %253 = vector.broadcast %251 : f32 to vector<1x256xf32>
    %254 = arith.mulf %253, %252 : vector<1x256xf32>
    %255 = arith.addf %250, %254 : vector<1x256xf32>
    %c20_94 = arith.constant 20 : index
    %256 = memref.load %arg4[%c20_94] : memref<49xf32, #tpu.memory_space<smem>>
    %c0_95 = arith.constant 0 : index
    %c38_96 = arith.constant 38 : index
    %257 = vector.load %arg7[%c0_95, %c38_96] : memref<1x358xf32, #tpu.memory_space<vmem>>, vector<1x256xf32>
    %258 = vector.broadcast %256 : f32 to vector<1x256xf32>
    %259 = arith.mulf %258, %257 : vector<1x256xf32>
    %260 = arith.addf %255, %259 : vector<1x256xf32>
    %c27 = arith.constant 27 : index
    %261 = memref.load %arg4[%c27] : memref<49xf32, #tpu.memory_space<smem>>
    %c0_97 = arith.constant 0 : index
    %c54 = arith.constant 54 : index
    %262 = vector.load %arg7[%c0_97, %c54] : memref<1x358xf32, #tpu.memory_space<vmem>>, vector<1x256xf32>
    %263 = vector.broadcast %261 : f32 to vector<1x256xf32>
    %264 = arith.mulf %263, %262 : vector<1x256xf32>
    %265 = arith.addf %260, %264 : vector<1x256xf32>
    %c34_98 = arith.constant 34 : index
    %266 = memref.load %arg4[%c34_98] : memref<49xf32, #tpu.memory_space<smem>>
    %c0_99 = arith.constant 0 : index
    %c70 = arith.constant 70 : index
    %267 = vector.load %arg7[%c0_99, %c70] : memref<1x358xf32, #tpu.memory_space<vmem>>, vector<1x256xf32>
    %268 = vector.broadcast %266 : f32 to vector<1x256xf32>
    %269 = arith.mulf %268, %267 : vector<1x256xf32>
    %270 = arith.addf %265, %269 : vector<1x256xf32>
    %c41 = arith.constant 41 : index
    %271 = memref.load %arg4[%c41] : memref<49xf32, #tpu.memory_space<smem>>
    %c0_100 = arith.constant 0 : index
    %c86 = arith.constant 86 : index
    %272 = vector.load %arg7[%c0_100, %c86] : memref<1x358xf32, #tpu.memory_space<vmem>>, vector<1x256xf32>
    %273 = vector.broadcast %271 : f32 to vector<1x256xf32>
    %274 = arith.mulf %273, %272 : vector<1x256xf32>
    %275 = arith.addf %270, %274 : vector<1x256xf32>
    %c48_101 = arith.constant 48 : index
    %276 = memref.load %arg4[%c48_101] : memref<49xf32, #tpu.memory_space<smem>>
    %c0_102 = arith.constant 0 : index
    %c102 = arith.constant 102 : index
    %277 = vector.load %arg7[%c0_102, %c102] : memref<1x358xf32, #tpu.memory_space<vmem>>, vector<1x256xf32>
    %278 = vector.broadcast %276 : f32 to vector<1x256xf32>
    %279 = arith.mulf %278, %277 : vector<1x256xf32>
    %280 = arith.addf %275, %279 : vector<1x256xf32>
    %c6_103 = arith.constant 6 : index
    %c0_104 = arith.constant 0 : index
    %281 = vector.load %arg3[%c6_103, %c0_104] : memref<8x256xf32, #tpu.memory_space<vmem>>, vector<1x256xf32>
    %282 = arith.mulf %280, %281 : vector<1x256xf32>
    %283 = arith.addf %244, %282 : vector<1x256xf32>
    %c0_105 = arith.constant 0 : index
    %284 = memref.load %arg5[%c0_105] : memref<1xf32, #tpu.memory_space<smem>>
    %285 = vector.broadcast %284 : f32 to vector<1x256xf32>
    %286 = arith.addf %283, %285 : vector<1x256xf32>
    %287 = arith.negf %286 : vector<1x256xf32>
    %288 = math.exp %287 : vector<1x256xf32>
    %cst_106 = arith.constant 1.000000e+00 : f32
    %289 = vector.broadcast %cst_106 : f32 to vector<1x256xf32>
    %290 = arith.addf %289, %288 : vector<1x256xf32>
    %291 = arith.divf %289, %290 : vector<1x256xf32>
    %c0_107 = arith.constant 0 : index
    %c0_108 = arith.constant 0 : index
    %c0_109 = arith.constant 0 : index
    %292 = vector.load %arg1[%c0_107, %c0_108, %c0_109] : memref<1x64x256xf32, #tpu.memory_space<vmem>>, vector<1x64x256xf32>
    %293 = vector.shape_cast %292 : vector<1x64x256xf32> to vector<64x256xf32>
    %294 = vector.broadcast %291 : vector<1x256xf32> to vector<64x256xf32>
    %295 = arith.mulf %293, %294 : vector<64x256xf32>
    %c0_110 = arith.constant 0 : index
    %c0_111 = arith.constant 0 : index
    %c0_112 = arith.constant 0 : index
    %296 = vector.load %arg6[%c0_110, %c0_111, %c0_112] : memref<1x64x256xf32, #tpu.memory_space<vmem>>, vector<1x64x256xf32>
    %297 = vector.shape_cast %296 : vector<1x64x256xf32> to vector<64x256xf32>
    %298 = vector.shape_cast %295 : vector<64x256xf32> to vector<1x64x256xf32>
    tpu.vector_store %arg6[%c0_110, %c0_111, %c0_112], %298 {strides = array<i32>} : memref<1x64x256xf32, #tpu.memory_space<vmem>>, vector<1x64x256xf32>,
    return
  }
  func.func @transform_0(%arg0: i32) -> (i32, i32, i32) {
    %c0_i32 = arith.constant 0 : i32
    %c0_i32_0 = arith.constant 0 : i32
    %c0_i32_1 = arith.constant 0 : i32
    return %arg0, %c0_i32, %c0_i32_0 : i32, i32, i32
  }
  func.func @transform_1(%arg0: i32) -> (i32, i32) {
    %c0_i32 = arith.constant 0 : i32
    %c0_i32_0 = arith.constant 0 : i32
    %c0_i32_1 = arith.constant 0 : i32
    return %c0_i32, %c0_i32_0 : i32, i32
  }
  func.func @transform_2(%arg0: i32) -> (i32, i32) {
    %c0_i32 = arith.constant 0 : i32
    %c0_i32_0 = arith.constant 0 : i32
    %c0_i32_1 = arith.constant 0 : i32
    return %c0_i32, %c0_i32_0 : i32, i32
  }
  func.func @transform_3(%arg0: i32) -> i32 {
    %c0_i32 = arith.constant 0 : i32
    %c0_i32_0 = arith.constant 0 : i32
    return %c0_i32 : i32
  }
  func.func @transform_4(%arg0: i32) -> i32 {
    %c0_i32 = arith.constant 0 : i32
    %c0_i32_0 = arith.constant 0 : i32
    return %c0_i32 : i32
  }
  func.func @transform_5(%arg0: i32) -> (i32, i32, i32) {
    %c0_i32 = arith.constant 0 : i32
    %c0_i32_0 = arith.constant 0 : i32
    %c0_i32_1 = arith.constant 0 : i32
    return %arg0, %c0_i32, %c0_i32_0 : i32, i32, i32
  }
}

</mosaic_0001>

<bundles_post_ra>
// kernel: spatial_gate.1
= control target key start
LH: loop header
LB: loop body
LE: loop exit
PB: predicated region body
PF: predicated region fallthrough
CT: control target
= control target key end

     0   :  { %s1561_s0 = inlined_call_operand.vmem [shape: f32[2,64,256], index: 0, kind: input, shape index: {}]   ;;  %s1562_s1 = inlined_call_operand.vmem [shape: f32[8,64], index: 1, kind: input, shape index: {}]   ;;  %s1563_s2 = inlined_call_operand.vmem [shape: f32[8,256], index: 2, kind: input, shape index: {}]   ;;  %s1564_s3 = inlined_call_operand.vmem [shape: f32[49], index: 3, kind: input, shape index: {}]   ;;  %s1565_s4 = inlined_call_operand.<no memory space> [shape: f32[1], index: 4, kind: input, shape index: {}]   ;;  %s1566_s5 = inlined_call_operand.vmem [shape: f32[2,64,256], index: 5, kind: output, shape index: {}]  }
   0x1   :  { %10 = sst [smem:[#allocation3]] %s1565_s4 }
   0x2   :  { %11 = vsyncpa [#allocation5], 0  ;;  %s1237_s20 = smov 0  }
   0x3 LB: > { %s1032_s21 = sadd.s32 4294967295, %s1181_s20   ;;  %p1034_p0 = scmp.ge.s32.totalorder %s1181_s20, 1  ;;  %s1181_s20 = sphi %s1237_s20, %s17_s20  }
   0x4   : > { %p158_p1 = scmp.lt.s32.totalorder %s1181_s20, 3  ;;  %s176_s24 = sshll.u32 %s1564_s3, 4  ;;  %s177_s24 = int_to_ptr.vmem [resolvable:$true] %s176_s24 }
   0x5   : > { %p1112_p3 = scmp.eq.s32.totalorder %s1032_s21, 0  ;;  %s1183_s4 = smov [#allocation4]  }
   0x6   : > { %p159_p2 = pnand %p1034_p0, %p158_p1 }
   0x8   : > { %p1108_p4 = pneg %p159_p2  ;;  %200 = sbr.rel (%p159_p2) target bundleno = 697 (0x2b9), region = 40 }
   0xa   : > { %p1109_p5 = pnand %p1112_p3, %p1108_p4 }
   0xc   : > { %1111 = dma.vmem_to_smem (!%p1109_p5), %s177_s24, 16, %s1183_s4, [#allocation5]  }
   0xd   : > { %1176 = dma.done.wait (%p1112_p3), [#allocation5], 16  }
   0xe   : > { %1178 = vsyncadd (%p1112_p3), [#allocation5], 4294967280 }
   0xf   : > { %207 = sfence }
  0x10   : > { %p230_p6 = scmp.lt.s32.totalorder %s1032_s21, 1  ;;  %v1074_v0 = vld [vmem:[%s1563_s2 + $0x3] ss:$8 sm:$0x3]  ;;  %s1184_s27 = smov 3   ;;  %vm266_vm0 = vcmask 523264   ;;  %v240_v19 = vlaneseq }
  0x11   : > { %629 = vrot.lane.b32.xlu0 %v1074_v0, %s1184_s27  ;;  %v249_v17 = vld [vmem:[%s1562_s1] sm:$0xff]  ;;  %s1185_s11 = smov 1   ;;  %v1186_v22 = vmov 0.0   ;;  %s1187_s14 = smov 2   ;;  %vm313_vm7 = vcmask 1040384   ;;  %vm318_vm8 = vcmask 416768  }
  0x12   : > { %s1572_s21 = smov (!%p230_p6, %s1032_s21), 1  ;;  %v1058_v18 = vld [vmem:[%s1563_s2 + $0x1] ss:$8 sm:$0x3]  ;;  %vm242_vm1 = vcmp.lt.s32.totalorder %v240_v19, 51  ;;  %vm1285_vm2 = vcmp.ge.s32.totalorder %v240_v19, 51 }
  0x13   : > { %s1102_s28 = sshll.u32 %s1572_s21, 7  ;;  %465 = vrot.lane.b32.xlu1 %v1058_v18, %s1185_s11  ;;  %vm246_vm3 = vcmp.lt.s32.totalorder %v240_v19, 102  ;;  %vm1289_vm4 = vcmp.lt.s32.totalorder %v240_v19, 307  ;;  %244 = vst.msk [vmem:[#allocation2] sm:$0x1] %vm242_vm1, %v1186_v22  ;;  %s1188_s15 = smov 51  }
  0x14   : > { %s1259_s6 = scalar_lea.vmem %s1561_s0, %s1102_s28  ;;  %vm247_vm5 = vmand %vm1285_vm2, %vm246_vm3  ;;  %v1066_v23 = vld [vmem:[%s1563_s2 + $0x2] ss:$8 sm:$0x3]  ;;  %v1082_v28 = vld [vmem:[%s1563_s2 + $0x4] ss:$8 sm:$0x3] }
  0x15   : > { %v265_v1 = vld [vmem:[%s1259_s6 + $0x78] sm:$0xff]  ;;  %v264_v2 = vld [vmem:[%s1259_s6 + $0x70] sm:$0xff]  ;;  %v263_v3 = vld [vmem:[%s1259_s6 + $0x68] sm:$0xff]  ;;  %248 = vst.msk [vmem:[#allocation2 + $0x2] sm:$0x1] %vm247_vm5, %v1186_v22  ;;  %s1189_s18 = smov 4  }
  0x16   : > { %298 = vmatpush.msra.mxu1 %v265_v1  ;;  %278 = vmatpush.msra.mxu0 %v264_v2  ;;  %v262_v4 = vld [vmem:[%s1259_s6 + $0x60] sm:$0xff]  ;;  %v261_v5 = vld [vmem:[%s1259_s6 + $0x58] sm:$0xff]  ;;  %v260_v6 = vld [vmem:[%s1259_s6 + $0x50] sm:$0xff]  ;;  %s1048_s19 = sld [smem:[#allocation4 + $0x1c]]  ;;  %s1190_s26 = smov 64   ;;  %vm337_vm9 = vcmask 916480  }
  0x17   : > { %v259_v7 = vld [vmem:[%s1259_s6 + $0x48] sm:$0xff]  ;;  %v258_v8 = vld [vmem:[%s1259_s6 + $0x40] sm:$0xff]  ;;  %v257_v9 = vld [vmem:[%s1259_s6 + $0x38] sm:$0xff]  ;;  %s1046_s22 = sld [smem:[#allocation4 + $0xe]]  ;;  %s1191_s27 = smov 96   ;;  %vm348_vm10 = vcmask 785408  }
  0x18   : > { %299 = vmatpush.msra.mxu1 %v263_v3  ;;  %279 = vmatpush.msra.mxu0 %v262_v4  ;;  %v256_v10 = vld [vmem:[%s1259_s6 + $0x30] sm:$0xff]  ;;  %v255_v11 = vld [vmem:[%s1259_s6 + $0x28] sm:$0xff]  ;;  %v254_v12 = vld [vmem:[%s1259_s6 + $0x20] sm:$0xff]  ;;  %s1045_s23 = sld [smem:[#allocation4 + $0x7]]  ;;  %s1192_s29 = smov 112   ;;  %vm359_vm11 = vcmask 654336  }
  0x19   : > { %v253_v13 = vld [vmem:[%s1259_s6 + $0x18] sm:$0xff]  ;;  %v252_v14 = vld [vmem:[%s1259_s6 + $0x10] sm:$0xff]  ;;  %v251_v15 = vld [vmem:[%s1259_s6 + $0x8] sm:$0xff]  ;;  %s1049_s24 = sld [smem:[#allocation4 + $0x23]]  ;;  %s1193_s9 = smov 48   ;;  %vm380_vm12 = vcmask 392192  }
  0x1a   : > { %300 = vmatpush.msra.mxu1 %v261_v5  ;;  %280 = vmatpush.msra.mxu0 %v260_v6  ;;  %v250_v16 = vld [vmem:[%s1259_s6] sm:$0xff]  ;;  %vm322_vm6 = vmand %vm1285_vm2, %vm1289_vm4  ;;  %s1047_s4 = sld [smem:[#allocation4 + $0x15]]  ;;  %s1194_s10 = smov 80   ;;  %vm391_vm13 = vcmask 261120   ;;  %vm550_vm14 = vcmask 15360   ;;  %vm468_vm15 = vcmask 7168  }
  0x1b   : > { %547 = vrot.lane.b32.xlu1 %v1066_v23, %s1187_s14  ;;  %s1050_s25 = sld [smem:[#allocation4 + $0x2a]]  ;;  %s1195_s11 = smov 32   ;;  %vm632_vm1 = vcmask 23552   ;;  %vm714_vm2 = vcmask 31744   ;;  %vm796_vm3 = vcmask 39936   ;;  %vm878_vm4 = vcmask 48128  }
  0x1c   : > { %301 = vmatpush.msra.mxu1 %v259_v7  ;;  %281 = vmatpush.msra.mxu0 %v258_v8  ;;  %v364_v33 = vstv %s1048_s19  ;;  %s1053_s30 = sld [smem:[#allocation4 + $0xf]]  ;;  %vm558_vm5 = vcmask 1031168  }
  0x1d   : > { %v342_v34 = vstv %s1046_s22  ;;  %s1052_s7 = sld [smem:[#allocation4 + $0x8]] }
  0x1e   : > { %302 = vmatpush.msra.mxu1 %v257_v9  ;;  %282 = vmatpush.msra.mxu0 %v256_v10  ;;  %v331_v35 = vstv %s1045_s23  ;;  %s1060_s8 = sld [smem:[#allocation4 + $0x9]] }
  0x1f   : > { %v374_v40 = vstv %s1049_s24  ;;  %s1061_s12 = sld [smem:[#allocation4 + $0x10]] }
  0x20   : > { %303 = vmatpush.msra.mxu1 %v255_v11  ;;  %283 = vmatpush.msra.mxu0 %v254_v12  ;;  %v353_v41 = vstv %s1047_s4  ;;  %s1054_s13 = sld [smem:[#allocation4 + $0x16]] }
  0x21   : > { %v385_v42 = vstv %s1050_s25  ;;  %s1068_s14 = sld [smem:[#allocation4 + $0xa]] }
  0x22   : > { %304 = vmatpush.msra.mxu1 %v253_v13  ;;  %284 = vmatpush.msra.mxu0 %v252_v14  ;;  %v413_v46 = vstv %s1053_s30  ;;  %s1055_s16 = sld [smem:[#allocation4 + $0x1d]] }
  0x23   : > { %711 = vrot.lane.b32.xlu1 %v1082_v28, %s1189_s18  ;;  %v403_v47 = vstv %s1052_s7  ;;  %s1069_s17 = sld [smem:[#allocation4 + $0x11]] }
  0x24   : > { %305 = vmatpush.msra.mxu1 %v251_v15  ;;  %285 = vmatpush.msra.mxu0 %v250_v16  ;;  %v485_v48 = vstv %s1060_s8  ;;  %s1056_s18 = sld [smem:[#allocation4 + $0x24]] }
  0x25   : > { %1044 = vmatmul.msk.f32.vlgmr.msra.gmra.mxu1 %vm266_vm0, %v249_v17  ;;  %1043 = vmatmul.msk.f32.vlgmr.msra.gmra.mxu0 %vm266_vm0, %v249_v17  ;;  %v495_v52 = vstv %s1061_s12  ;;  %s1076_s19 = sld [smem:[#allocation4 + $0xb]] }
  0x26   : > { %v423_v53 = vstv %s1054_s13  ;;  %s1063_s22 = sld [smem:[#allocation4 + $0x1e]] }
  0x27   : > { %v567_v54 = vstv %s1068_s14  ;;  %s1077_s23 = sld [smem:[#allocation4 + $0x12]] }
  0x28   : > { %v433_v59 = vstv %s1055_s16  ;;  %s1070_s24 = sld [smem:[#allocation4 + $0x18]] }
  0x29   : > { %v577_v60 = vstv %s1069_s17  ;;  %s1084_s4 = sld [smem:[#allocation4 + $0xc]] }
  0x2a   : > { %v443_v0 = vstv %s1056_s18  ;;  %s1064_s25 = sld [smem:[#allocation4 + $0x25]] }
  0x2b   : > { %v649_v1 = vstv %s1076_s19  ;;  %s1057_s30 = sld [smem:[#allocation4 + $0x2b]] }
  0x2c   : > { %v515_v2 = vstv %s1063_s22  ;;  %s1071_s7 = sld [smem:[#allocation4 + $0x1f]] }
  0x2d   : > { %v659_v6 = vstv %s1077_s23  ;;  %s1085_s8 = sld [smem:[#allocation4 + $0x13]] }
  0x2e   : > { %v587_v7 = vstv %s1070_s24  ;;  %s1078_s12 = sld [smem:[#allocation4 + $0x19]] }
  0x2f   : > { %v731_v8 = vstv %s1084_s4  ;;  %s1092_s13 = sld [smem:[#allocation4 + $0xd]] }
  0x30   : > { %v525_v12 = vstv %s1064_s25  ;;  %s1065_s14 = sld [smem:[#allocation4 + $0x2c]] }
  0x31   : > { %v453_v13 = vstv %s1057_s30  ;;  %s1072_s16 = sld [smem:[#allocation4 + $0x26]] }
  0x32   : > { %v597_v14 = vstv %s1071_s7  ;;  %s1086_s17 = sld [smem:[#allocation4 + $0x1a]] }
  0x33   : > { %v741_v18 = vstv %s1085_s8  ;;  %s1087_s18 = sld [smem:[#allocation4 + $0x21]]  ;;  %s1196_s8 = smov 5  }
  0x34   : > { %v669_v19 = vstv %s1078_s12  ;;  %s1093_s19 = sld [smem:[#allocation4 + $0x14]] }
  0x35   : > { %v813_v20 = vstv %s1092_s13  ;;  %s1073_s22 = sld [smem:[#allocation4 + $0x2d]] }
  0x36   : > { %s1080_s23 = sld [smem:[#allocation4 + $0x27]] }
  0x37   : > { %s1094_s24 = sld [smem:[#allocation4 + $0x1b]] }
  0x38   : > { %s1095_s4 = sld [smem:[#allocation4 + $0x22]] }
  0x39   : > { %s1096_s25 = sld [smem:[#allocation4 + $0x29]] }
  0x3a   : > { %s1089_s12 = sld [smem:[#allocation4 + $0x2f]] }
  0x3b   : > { %s1097_s13 = sld [smem:[#allocation4 + $0x30]] }
  0x3c   : > { %s890_s7 = sld [smem:[#allocation3]] }
  0x83   : > { %v1305_v29 = vpop.permute.xlu0 %629 }
  0xa2   : > { %v307_v24 = vpop.f32.mrf.mxu1  ;;  %v287_v25 = vpop.f32.mrf.mxu0 }
  0xa3   : > { %v312_v26 = vrot.slane %v307_v24, 7  ;;  %v535_v24 = vstv %s1065_s14 }
  0xa5   : > { %v314_v27 = vsel %vm313_vm7, %v287_v25, %v312_v26  ;;  %v607_v26 = vstv %s1072_s16  ;;  %s1067_s16 = sld [smem:[#allocation4 + $0x3]]  ;;  %vm722_vm7 = vcmask 1014784  }
  0xa6   : > { %315 = vrot.lane.b32.xlu0 %v314_v27, %s1188_s15  ;;  %s1062_s15 = sld [smem:[#allocation4 + $0x17]] }
  0xac   : > { %v505_v58 = vstv %s1062_s15  ;;  %s1079_s15 = sld [smem:[#allocation4 + $0x20]] }
  0xb2   : > { %v679_v25 = vstv %s1079_s15  ;;  %s1197_s15 = smov 6  }
 0x118   : > { %v316_v30 = vpop.permute.xlu0 %315 }
 0x119   : > { %v317_v31 = vrot.slane %v316_v30, 7 }
 0x11b   : > { %v319_v32 = vsel %vm318_vm8, %v317_v31, %v316_v30  ;;  %v751_v31 = vstv %s1086_s17  ;;  %s1198_s17 = smov 126   ;;  %vm804_vm8 = vcmask 1006592  }
 0x11c   : > { %323 = vst.msk [vmem:[#allocation2] sm:$0x7] %vm322_vm6, %v319_v32  ;;  %v761_v32 = vstv %s1087_s18  ;;  %s1199_s18 = smov 127   ;;  %vm640_vm6 = vcmask 1022976  }
 0x123   : > { %v1312_v36 = vld [vmem:[#allocation2] sm:$0x7] }
 0x124   : > { %v365_v37 = vmul.f32 %v364_v33, %v1312_v36  ;;  %v343_v38 = vmul.f32 %v342_v34, %v1312_v36  ;;  %v332_v39 = vmul.f32 %v331_v35, %v1312_v36  ;;  %v375_v43 = vmul.f32 %v374_v40, %v1312_v36 }
 0x125   : > { %v354_v44 = vmul.f32 %v353_v41, %v1312_v36  ;;  %v386_v45 = vmul.f32 %v385_v42, %v1312_v36  ;;  %v414_v49 = vmul.f32 %v413_v46, %v1312_v36  ;;  %v404_v50 = vmul.f32 %v403_v47, %v1312_v36  ;;  %v1380_v41 = vpop.permute.xlu1 %465 }
 0x126   : > { %367 = vrot.lane.b32.xlu2 %v365_v37, %s1190_s26  ;;  %345 = vrot.lane.b32.xlu1 %v343_v38, %s1191_s27  ;;  %v486_v51 = vmul.f32 %v485_v48, %v1312_v36  ;;  %v496_v55 = vmul.f32 %v495_v52, %v1312_v36  ;;  %v424_v56 = vmul.f32 %v423_v53, %v1312_v36  ;;  %v823_v33 = vstv %s1093_s19  ;;  %v1090_v48 = vld [vmem:[%s1563_s2 + $0x5] ss:$8 sm:$0x3]  ;;  %s1075_s19 = sld [smem:[#allocation4 + $0x4]] }
 0x127   : > { %334 = vrot.lane.b32.xlu0 %v332_v39, %s1192_s29  ;;  %v568_v57 = vmul.f32 %v567_v54, %v1312_v36  ;;  %v506_v61 = vmul.f32 %v505_v58, %v1312_v36  ;;  %v434_v62 = vmul.f32 %v433_v59, %v1312_v36  ;;  %v578_v63 = vmul.f32 %v577_v60, %v1312_v36 }
 0x128   : > { %v444_v3 = vmul.f32 %v443_v0, %v1312_v36  ;;  %v650_v4 = vmul.f32 %v649_v1, %v1312_v36  ;;  %v516_v5 = vmul.f32 %v515_v2, %v1312_v36  ;;  %v660_v9 = vmul.f32 %v659_v6, %v1312_v36  ;;  %v325_v1 = vld [vmem:[#allocation2] sm:$0x3] }
 0x129   : > { %v588_v10 = vmul.f32 %v587_v7, %v1312_v36  ;;  %v732_v11 = vmul.f32 %v731_v8, %v1312_v36  ;;  %v526_v15 = vmul.f32 %v525_v12, %v1312_v36  ;;  %v454_v16 = vmul.f32 %v453_v13, %v1312_v36 }
 0x12a   : > { %v598_v17 = vmul.f32 %v597_v14, %v1312_v36  ;;  %v742_v21 = vmul.f32 %v741_v18, %v1312_v36  ;;  %v670_v22 = vmul.f32 %v669_v19, %v1312_v36  ;;  %v814_v23 = vmul.f32 %v813_v20, %v1312_v36 }
 0x12b   : > { %v536_v27 = vmul.f32 %v535_v24, %v1312_v36  ;;  %v680_v28 = vmul.f32 %v679_v25, %v1312_v36  ;;  %v608_v30 = vmul.f32 %v607_v26, %v1312_v36  ;;  %v752_v34 = vmul.f32 %v751_v31, %v1312_v36 }
 0x12c   : > { %v762_v35 = vmul.f32 %v761_v32, %v1312_v36  ;;  %v824_v37 = vmul.f32 %v823_v33, %v1312_v36  ;;  %v617_v38 = vstv %s1073_s22  ;;  %v689_v40 = vstv %s1080_s23  ;;  %s1083_s22 = sld [smem:[#allocation4 + $0x5]] }
 0x12d   : > { %v618_v42 = vmul.f32 %v617_v38, %v1312_v36  ;;  %v833_v46 = vstv %s1094_s24  ;;  %v843_v47 = vstv %s1095_s4  ;;  %v853_v54 = vstv %s1096_s25  ;;  %s1493_s23 = sld [smem:[#allocation4 + $0x6]]  ;;  %s1201_s24 = smov 124  }
 0x12e   : > { %377 = vrot.lane.b32.xlu2 %v375_v43, %s1193_s9  ;;  %356 = vrot.lane.b32.xlu1 %v354_v44, %s1194_s10  ;;  %v690_v44 = vmul.f32 %v689_v40, %v1312_v36  ;;  %v781_v59 = vstv %s1089_s12  ;;  %s1202_s4 = smov 123  }
 0x12f   : > { %388 = vrot.lane.b32.xlu0 %v386_v45, %s1195_s11  ;;  %v782_v60 = vmul.f32 %v781_v59, %v1312_v36 }
 0x136   : > { %416 = vrot.lane.b32.xlu2 %v414_v49, %s1191_s27  ;;  %406 = vrot.lane.b32.xlu1 %v404_v50, %s1192_s29  ;;  %v834_v49 = vmul.f32 %v833_v46, %v1312_v36  ;;  %v1392_v50 = vpop.permute.xlu1 %547 }
 0x137   : > { %488 = vrot.lane.b32.xlu0 %v486_v51, %s1192_s29  ;;  %v844_v51 = vmul.f32 %v843_v47, %v1312_v36 }
 0x13e   : > { %498 = vrot.lane.b32.xlu2 %v496_v55, %s1191_s27  ;;  %426 = vrot.lane.b32.xlu1 %v424_v56, %s1194_s10  ;;  %v854_v56 = vmul.f32 %v853_v54, %v1312_v36 }
 0x13f   : > { %570 = vrot.lane.b32.xlu0 %v568_v57, %s1192_s29  ;;  %v1400_v57 = vpop.permute.xlu1 %711 }
 0x146   : > { %508 = vrot.lane.b32.xlu2 %v506_v61, %s1194_s10  ;;  %436 = vrot.lane.b32.xlu1 %v434_v62, %s1190_s26  ;;  %v1098_v61 = vld [vmem:[%s1563_s2 + $0x6] ss:$8 sm:$0x3] }
 0x147   : > { %580 = vrot.lane.b32.xlu0 %v578_v63, %s1191_s27 }
 0x14e   : > { %446 = vrot.lane.b32.xlu2 %v444_v3, %s1193_s9  ;;  %652 = vrot.lane.b32.xlu1 %v650_v4, %s1192_s29  ;;  %v863_v3 = vstv %s1097_s13 }
 0x14f   : > { %518 = vrot.lane.b32.xlu0 %v516_v5, %s1190_s26  ;;  %v864_v8 = vmul.f32 %v863_v3, %v1312_v36 }
 0x156   : > { %662 = vrot.lane.b32.xlu2 %v660_v9, %s1191_s27  ;;  %590 = vrot.lane.b32.xlu1 %v588_v10, %s1194_s10 }
 0x157   : > { %734 = vrot.lane.b32.xlu0 %v732_v11, %s1192_s29 }
 0x15e   : > { %528 = vrot.lane.b32.xlu2 %v526_v15, %s1193_s9  ;;  %456 = vrot.lane.b32.xlu1 %v454_v16, %s1195_s11 }
 0x15f   : > { %600 = vrot.lane.b32.xlu0 %v598_v17, %s1190_s26 }
 0x166   : > { %744 = vrot.lane.b32.xlu2 %v742_v21, %s1191_s27  ;;  %672 = vrot.lane.b32.xlu1 %v670_v22, %s1194_s10 }
 0x167   : > { %816 = vrot.lane.b32.xlu0 %v814_v23, %s1192_s29  ;;  %s1081_s29 = sld [smem:[#allocation4 + $0x2e]] }
 0x16d   : > { %v699_v39 = vstv %s1081_s29  ;;  %s1200_s29 = smov 125  }
 0x16e   : > { %538 = vrot.lane.b32.xlu2 %v536_v27, %s1195_s11  ;;  %682 = vrot.lane.b32.xlu1 %v680_v28, %s1190_s26  ;;  %v700_v43 = vmul.f32 %v699_v39, %v1312_v36 }
 0x16f   : > { %610 = vrot.lane.b32.xlu0 %v608_v30, %s1193_s9 }
 0x176   : > { %754 = vrot.lane.b32.xlu2 %v752_v34, %s1194_s10  ;;  %764 = vrot.lane.b32.xlu1 %v762_v35, %s1190_s26 }
 0x177   : > { %826 = vrot.lane.b32.xlu0 %v824_v37, %s1191_s27  ;;  %s1088_s27 = sld [smem:[#allocation4 + $0x28]] }
 0x17d   : > { %v771_v53 = vstv %s1088_s27  ;;  %s1203_s27 = smov 122  }
 0x17e   : > { %620 = vrot.lane.b32.xlu2 %v618_v42, %s1195_s11  ;;  %702 = vrot.lane.b32.xlu1 %v700_v43, %s1195_s11  ;;  %v772_v55 = vmul.f32 %v771_v53, %v1312_v36 }
 0x17f   : > { %692 = vrot.lane.b32.xlu0 %v690_v44, %s1193_s9 }
 0x180   : > { %v368_v45 = vpop.permute.xlu2 %367 }
 0x181   : > { %v369_v14 = vrot.slane %v368_v45, 1 }
 0x183   : > { %v370_v20 = vsel %vm266_vm0, %v368_v45, %v369_v14 }
 0x186   : > { %836 = vrot.lane.b32.xlu2 %v834_v49, %s1194_s10  ;;  %793 = vrot.lane.b32.xlu1 %v1090_v48, %s1196_s8  ;;  %s324_s10 = sld [smem:[#allocation4]] }
 0x187   : > { %846 = vrot.lane.b32.xlu0 %v844_v51, %s1190_s26 }
 0x188   : > { %v378_v52 = vpop.permute.xlu2 %377 }
 0x189   : > { %v379_v17 = vrot.slane %v378_v52, 1 }
 0x18b   : > { %v381_v23 = vsel %vm380_vm12, %v378_v52, %v379_v17 }
 0x18c   : > { %v326_v0 = vstv %s324_s10  ;;  %s1524_s10 = scalar_lea.vmem %s1566_s5, %s1102_s28 }
 0x18d   : > { %v327_v6 = vmul.f32 %v326_v0, %v325_v1 }
 0x18e   : > { %774 = vrot.lane.b32.xlu2 %v772_v55, %s1193_s9 }
 0x18f   : > { %856 = vrot.lane.b32.xlu0 %v854_v56, %s1193_s9  ;;  %s1059_s9 = sld [smem:[#allocation4 + $0x2]] }
 0x190   : > { %v1403_v58 = vpop.permute.xlu2 %416 }
 0x195   : > { %v481_v35 = vstv %s1059_s9 }
 0x196   : > { %784 = vrot.lane.b32.xlu2 %v782_v60, %s1195_s11  ;;  %v482_v42 = vmul.f32 %v481_v35, %v1312_v36 }
 0x197   : > { %875 = vrot.lane.b32.xlu0 %v1098_v61, %s1197_s15 }
 0x198   : > { %v499_v62 = vpop.permute.xlu2 %498  ;;  %v346_v63 = vpop.permute.xlu1 %345 }
 0x199   : > { %v335_v2 = vpop.permute.xlu0 %334  ;;  %v347_v4 = vrot.slane %v346_v63, 1  ;;  %v500_v43 = vrot.slane %v499_v62, 1 }
 0x19a   : > { %v336_v5 = vrot.slane %v335_v2, 1 }
 0x19b   : > { %v349_v10 = vsel %vm348_vm10, %v346_v63, %v347_v4  ;;  %v501_v45 = vsel %vm348_vm10, %v499_v62, %v500_v43  ;;  %v418_v62 = vrot.slane %v1403_v58, 1  ;;  %v549_v4 = vrot.slane %v1392_v50, 7 }
 0x19c   : > { %v338_v7 = vsel %vm337_vm9, %v335_v2, %v336_v5 }
 0x19d   : > { %v340_v9 = vadd.f32 %v338_v7, %v327_v6  ;;  %v419_v7 = vsel %vm348_vm10, %v1403_v58, %v418_v62 }
 0x19e   : > { %866 = vrot.lane.b32.xlu2 %v864_v8, %s1195_s11  ;;  %s1051_s11 = sld [smem:[#allocation4 + $0x1]] }
 0x19f   : > { %v351_v11 = vadd.f32 %v349_v10, %v340_v9 }
 0x1a0   : > { %v509_v12 = vpop.permute.xlu2 %508  ;;  %v357_v13 = vpop.permute.xlu1 %356 }
 0x1a1   : > { %v358_v15 = vrot.slane %v357_v13, 1  ;;  %v389_v16 = vpop.permute.xlu0 %388  ;;  %v510_v46 = vrot.slane %v509_v12, 1 }
 0x1a2   : > { %v390_v21 = vrot.slane %v389_v16, 1 }
 0x1a3   : > { %v360_v18 = vsel %vm359_vm11, %v357_v13, %v358_v15  ;;  %v511_v55 = vsel %vm359_vm11, %v509_v12, %v510_v46 }
 0x1a4   : > { %v362_v19 = vadd.f32 %v360_v18, %v351_v11  ;;  %v392_v27 = vsel %vm391_vm13, %v389_v16, %v390_v21  ;;  %v399_v52 = vstv %s1051_s11  ;;  %v551_v18 = vsel %vm550_vm14, %v549_v4, %v1392_v50 }
 0x1a5   : > { %v400_v59 = vmul.f32 %v399_v52, %v1312_v36 }
 0x1a6   : > { %v372_v22 = vadd.f32 %v370_v20, %v362_v19 }
 0x1a8   : > { %v383_v24 = vadd.f32 %v381_v23, %v372_v22  ;;  %v1417_v25 = vpop.permute.xlu2 %446  ;;  %v407_v26 = vpop.permute.xlu1 %406  ;;  %v467_v23 = vrot.slane %v1380_v41, 7 }
 0x1a9   : > { %v489_v28 = vpop.permute.xlu0 %488  ;;  %v408_v47 = vrot.slane %v407_v26, 1  ;;  %v448_v58 = vrot.slane %v1417_v25, 1 }
 0x1aa   : > { %v1420_v30 = vadd.f32 %v392_v27, %v383_v24  ;;  %v490_v34 = vrot.slane %v489_v28, 1 }
 0x1ab   : > { %v409_v56 = vsel %vm337_vm9, %v407_v26, %v408_v47  ;;  %v449_v24 = vsel %vm380_vm12, %v1417_v25, %v448_v58 }
 0x1ac   : > { %v491_v39 = vsel %vm337_vm9, %v489_v28, %v490_v34  ;;  %v411_v1 = vadd.f32 %v409_v56, %v400_v59  ;;  %v469_v34 = vsel %vm468_vm15, %v467_v23, %v1380_v41 }
 0x1ad   : > { %v493_v44 = vadd.f32 %v491_v39, %v482_v42 }
 0x1ae   : > { %v421_v12 = vadd.f32 %v419_v7, %v411_v1 }
 0x1af   : > { %v503_v48 = vadd.f32 %v501_v45, %v493_v44 }
 0x1b0   : > { %v1422_v31 = vpop.permute.xlu2 %662  ;;  %v427_v32 = vpop.permute.xlu1 %426 }
 0x1b1   : > { %v1424_v33 = vpop.permute.xlu0 %570  ;;  %v513_v60 = vadd.f32 %v511_v55, %v503_v48  ;;  %v428_v63 = vrot.slane %v427_v32, 1 }
 0x1b2   : > { %v572_v35 = vrot.slane %v1424_v33, 1 }
 0x1b3   : > { %v429_v8 = vsel %vm359_vm11, %v427_v32, %v428_v63  ;;  %v631_v63 = vrot.slane %v1305_v29, 7 }
 0x1b4   : > { %v431_v16 = vadd.f32 %v429_v8, %v421_v12  ;;  %v573_v44 = vsel %vm337_vm9, %v1424_v33, %v572_v35 }
 0x1b5   : > { %v633_v7 = vsel %vm632_vm1, %v631_v63, %v1305_v29 }
 0x1b8   : > { %v529_v37 = vpop.permute.xlu2 %528  ;;  %v437_v38 = vpop.permute.xlu1 %436 }
 0x1b9   : > { %v1427_v40 = vpop.permute.xlu0 %580  ;;  %v530_v0 = vrot.slane %v529_v37, 1  ;;  %v438_v3 = vrot.slane %v437_v38, 1 }
 0x1ba   : > { %v582_v39 = vrot.slane %v1427_v40, 1 }
 0x1bb   : > { %v531_v9 = vsel %vm380_vm12, %v529_v37, %v530_v0  ;;  %v439_v14 = vsel %vm266_vm0, %v437_v38, %v438_v3  ;;  %v563_v38 = vstv %s1067_s16  ;;  %v645_v3 = vstv %s1075_s19 }
 0x1bc   : > { %v441_v19 = vadd.f32 %v439_v14, %v431_v16  ;;  %v564_v46 = vmul.f32 %v563_v38, %v1312_v36  ;;  %v583_v41 = vsel %vm348_vm10, %v1427_v40, %v582_v39  ;;  %v646_v12 = vmul.f32 %v645_v3, %v1312_v36 }
 0x1bd   : > { %v664_v16 = vrot.slane %v1422_v31, 1 }
 0x1be   : > { %v451_v28 = vadd.f32 %v449_v24, %v441_v19  ;;  %v575_v48 = vadd.f32 %v573_v44, %v564_v46 }
 0x1c0   : > { %v1431_v49 = vpop.permute.xlu2 %744  ;;  %v1433_v51 = vpop.permute.xlu1 %652 }
 0x1c1   : > { %v519_v53 = vpop.permute.xlu0 %518  ;;  %v654_v40 = vrot.slane %v1433_v51, 1  ;;  %v746_v58 = vrot.slane %v1431_v49, 1 }
 0x1c2   : > { %v520_v54 = vrot.slane %v519_v53, 1 }
 0x1c3   : > { %v655_v8 = vsel %vm337_vm9, %v1433_v51, %v654_v40  ;;  %v747_v24 = vsel %vm348_vm10, %v1431_v49, %v746_v58 }
 0x1c4   : > { %v521_v61 = vsel %vm266_vm0, %v519_v53, %v520_v54  ;;  %v585_v53 = vadd.f32 %v583_v41, %v575_v48  ;;  %v657_v29 = vadd.f32 %v655_v8, %v646_v12 }
 0x1c5   : > { %v523_v2 = vadd.f32 %v521_v61, %v513_v60 }
 0x1c7   : > { %v533_v13 = vadd.f32 %v531_v9, %v523_v2 }
 0x1c8   : > { %v539_v5 = vpop.permute.xlu2 %538  ;;  %v591_v6 = vpop.permute.xlu1 %590 }
 0x1c9   : > { %v540_v10 = vrot.slane %v539_v5, 1  ;;  %v1445_v11 = vpop.permute.xlu0 %734  ;;  %v592_v45 = vrot.slane %v591_v6, 1 }
 0x1ca   : > { %v736_v1 = vrot.slane %v1445_v11, 1 }
 0x1cb   : > { %v541_v15 = vsel %vm391_vm13, %v539_v5, %v540_v10  ;;  %v593_v52 = vsel %vm359_vm11, %v591_v6, %v592_v45  ;;  %v727_v5 = vstv %s1083_s22 }
 0x1cc   : > { %v543_v17 = vadd.f32 %v541_v15, %v533_v13  ;;  %v595_v59 = vadd.f32 %v593_v52, %v585_v53  ;;  %v737_v13 = vsel %vm337_vm9, %v1445_v11, %v736_v1  ;;  %v665_v11 = vsel %vm348_vm10, %v1422_v31, %v664_v16 }
 0x1cd   : > { %v809_v52 = vstv %s1493_s23 }
 0x1ce   : > { %v553_v20 = vmul.f32 %v551_v18, %v543_v17  ;;  %v728_v17 = vmul.f32 %v727_v5, %v1312_v36 }
 0x1d0   : > { %v1451_v21 = vpop.permute.xlu2 %754  ;;  %v457_v22 = vpop.permute.xlu1 %456  ;;  %555 = vrot.lane.b32.xlu2 %v553_v20, %s1198_s17  ;;  %v739_v51 = vadd.f32 %v737_v13, %v728_v17 }
 0x1d1   : > { %v458_v26 = vrot.slane %v457_v22, 1  ;;  %v601_v27 = vpop.permute.xlu0 %600  ;;  %v756_v19 = vrot.slane %v1451_v21, 1 }
 0x1d2   : > { %v602_v47 = vrot.slane %v601_v27, 1 }
 0x1d3   : > { %v459_v50 = vsel %vm391_vm13, %v457_v22, %v458_v26  ;;  %v757_v26 = vsel %vm359_vm11, %v1451_v21, %v756_v19  ;;  %v713_v21 = vrot.slane %v1400_v57, 7 }
 0x1d4   : > { %v461_v32 = vadd.f32 %v459_v50, %v451_v28  ;;  %v603_v54 = vsel %vm266_vm0, %v601_v27, %v602_v47  ;;  %v667_v27 = vadd.f32 %v665_v11, %v657_v29  ;;  %v749_v28 = vadd.f32 %v747_v24, %v739_v51  ;;  %v395_v11 = vld [vmem:[%s1563_s2] ss:$8 sm:$0x3] }
 0x1d5   : > { %v605_v62 = vadd.f32 %v603_v54, %v595_v59  ;;  %v715_v59 = vsel %vm714_vm2, %v713_v21, %v1400_v57 }
 0x1d6   : > { %v471_v37 = vmul.f32 %v469_v34, %v461_v32  ;;  %v759_v38 = vadd.f32 %v757_v26, %v749_v28 }
 0x1d8   : > { %v621_v42 = vpop.permute.xlu2 %620  ;;  %473 = vrot.lane.b32.xlu1 %v471_v37, %s1199_s18  ;;  %v673_v43 = vpop.permute.xlu1 %672 }
 0x1d9   : > { %v1460_v25 = vpop.permute.xlu0 %816  ;;  %v622_v60 = vrot.slane %v621_v42, 1  ;;  %v674_v18 = vrot.slane %v673_v43, 1 }
 0x1da   : > { %v818_v47 = vrot.slane %v1460_v25, 1 }
 0x1db   : > { %v623_v4 = vsel %vm391_vm13, %v621_v42, %v622_v60  ;;  %v675_v23 = vsel %vm359_vm11, %v673_v43, %v674_v18 }
 0x1dc   : > { %v677_v35 = vadd.f32 %v675_v23, %v667_v27  ;;  %v396_v27 = vmul.f32 %v395_v11, %v1420_v30  ;;  %v925_v11 = vld [vmem:[%s1259_s6 + $0x68] sm:$0xff] }
 0x1e0   : > { %v1469_v55 = vpop.permute.xlu2 %836  ;;  %v683_v56 = vpop.permute.xlu1 %682 }
 0x1e1   : > { %v611_v33 = vpop.permute.xlu0 %610  ;;  %v684_v20 = vrot.slane %v683_v56, 1 }
 0x1e2   : > { %v612_v61 = vrot.slane %v611_v33, 1 }
 0x1e3   : > { %v685_v50 = vsel %vm266_vm0, %v683_v56, %v684_v20 }
 0x1e4   : > { %v613_v0 = vsel %vm380_vm12, %v611_v33, %v612_v61  ;;  %v687_v49 = vadd.f32 %v685_v50, %v677_v35 }
 0x1e5   : > { %v615_v2 = vadd.f32 %v613_v0, %v605_v62  ;;  %v819_v0 = vsel %vm337_vm9, %v1460_v25, %v818_v47  ;;  %vm886_vm9 = vcmask 998400  }
 0x1e7   : > { %v625_v6 = vadd.f32 %v623_v4, %v615_v2  ;;  %v810_v2 = vmul.f32 %v809_v52, %v1312_v36 }
 0x1e8   : > { %v775_v9 = vpop.permute.xlu2 %774  ;;  %v765_v10 = vpop.permute.xlu1 %764 }
 0x1e9   : > { %v827_v14 = vpop.permute.xlu0 %826  ;;  %v635_v15 = vmul.f32 %v633_v7, %v625_v6  ;;  %v766_v22 = vrot.slane %v765_v10, 1  ;;  %v776_v43 = vrot.slane %v775_v9, 1  ;;  %v821_v57 = vadd.f32 %v819_v0, %v810_v2 }
 0x1ea   : > { %v828_v33 = vrot.slane %v827_v14, 1  ;;  %v838_v6 = vrot.slane %v1469_v55, 1 }
 0x1eb   : > { %637 = vrot.lane.b32.xlu0 %v635_v15, %s1200_s29  ;;  %v767_v31 = vsel %vm266_vm0, %v765_v10, %v766_v22  ;;  %v777_v53 = vsel %vm380_vm12, %v775_v9, %v776_v43 }
 0x1ec   : > { %v769_v45 = vadd.f32 %v767_v31, %v759_v38  ;;  %v829_v4 = vsel %vm348_vm10, %v827_v14, %v828_v33  ;;  %v839_v25 = vsel %vm359_vm11, %v1469_v55, %v838_v6  ;;  %v1148_v6 = vld [vmem:[%s1259_s6 + $0x8] sm:$0xff] }
 0x1ed   : > { %v831_v8 = vadd.f32 %v829_v4, %v821_v57 }
 0x1ee   : > { %v779_v60 = vadd.f32 %v777_v53, %v769_v45 }
 0x1ef   : > { %v841_v13 = vadd.f32 %v839_v25, %v831_v8  ;;  %v1149_v8 = vld [vmem:[%s1259_s6 + $0x10] sm:$0xff]  ;;  %v1150_v25 = vld [vmem:[%s1259_s6 + $0x18] sm:$0xff] }
 0x1f0   : > { %v785_v32 = vpop.permute.xlu2 %784  ;;  %v703_v34 = vpop.permute.xlu1 %702 }
 0x1f1   : > { %v693_v37 = vpop.permute.xlu0 %692  ;;  %v704_v39 = vrot.slane %v703_v34, 1  ;;  %v786_v44 = vrot.slane %v785_v32, 1 }
 0x1f2   : > { %v694_v42 = vrot.slane %v693_v37, 1 }
 0x1f3   : > { %v705_v48 = vsel %vm391_vm13, %v703_v34, %v704_v39  ;;  %v787_v54 = vsel %vm391_vm13, %v785_v32, %v786_v44 }
 0x1f4   : > { %v695_v46 = vsel %vm380_vm12, %v693_v37, %v694_v42  ;;  %v789_v1 = vadd.f32 %v787_v54, %v779_v60 }
 0x1f5   : > { %v697_v41 = vadd.f32 %v695_v46, %v687_v49 }
 0x1f7   : > { %v707_v56 = vadd.f32 %v705_v48, %v697_v41  ;;  %v891_v41 = vstv %s890_s7 }
 0x1f8   : > { %v794_v61 = vpop.permute.xlu1 %793  ;;  %v867_v12 = vpop.permute.xlu2 %866 }
 0x1f9   : > { %v795_v62 = vrot.slane %v794_v61, 7  ;;  %v847_v63 = vpop.permute.xlu0 %846  ;;  %v717_v40 = vmul.f32 %v715_v59, %v707_v56  ;;  %v868_v16 = vrot.slane %v867_v12, 1 }
 0x1fa   : > { %v848_v7 = vrot.slane %v847_v63, 1 }
 0x1fb   : > { %v797_v3 = vsel %vm796_vm3, %v795_v62, %v794_v61  ;;  %719 = vrot.lane.b32.xlu1 %v717_v40, %s1201_s24  ;;  %v869_v58 = vsel %vm391_vm13, %v867_v12, %v868_v16  ;;  %v1153_v16 = vld [vmem:[%s1259_s6 + $0x30] sm:$0xff] }
 0x1fc   : > { %v799_v5 = vmul.f32 %v797_v3, %v789_v1  ;;  %v849_v10 = vsel %vm266_vm0, %v847_v63, %v848_v7  ;;  %vm476_vm0 = vcmask 1039360  }
 0x1fd   : > { %v851_v14 = vadd.f32 %v849_v10, %v841_v13  ;;  %v1152_v13 = vld [vmem:[%s1259_s6 + $0x28] sm:$0xff] }
 0x1fe   : > { %801 = vrot.lane.b32.xlu2 %v799_v5, %s1202_s4  ;;  %v1147_v5 = vld [vmem:[%s1259_s6] sm:$0xff] }
 0x201   : > { %v857_v9 = vpop.permute.xlu0 %856 }
 0x202   : > { %v858_v36 = vrot.slane %v857_v9, 1 }
 0x204   : > { %v859_v15 = vsel %vm380_vm12, %v857_v9, %v858_v36  ;;  %v1151_v36 = vld [vmem:[%s1259_s6 + $0x20] sm:$0xff] }
 0x205   : > { %v861_v17 = vadd.f32 %v859_v15, %v851_v14  ;;  %v921_v14 = vld [vmem:[%s1259_s6 + $0x48] sm:$0xff] }
 0x207   : > { %v871_v19 = vadd.f32 %v869_v58, %v861_v17  ;;  %v1154_v58 = vld [vmem:[%s1259_s6 + $0x38] sm:$0xff] }
 0x209   : > { %v876_v18 = vpop.permute.xlu0 %875 }
 0x20a   : > { %v877_v29 = vrot.slane %v876_v18, 7 }
 0x20c   : > { %v879_v51 = vsel %vm878_vm4, %v877_v29, %v876_v18  ;;  %v922_v18 = vld [vmem:[%s1259_s6 + $0x50] sm:$0xff] }
 0x20d   : > { %v881_v20 = vmul.f32 %v879_v51, %v871_v19  ;;  %v923_v19 = vld [vmem:[%s1259_s6 + $0x58] sm:$0xff]  ;;  %v1155_v51 = vld [vmem:[%s1259_s6 + $0x40] sm:$0xff] }
 0x20f   : > { %883 = vrot.lane.b32.xlu0 %v881_v20, %s1203_s27 }
 0x22a   : > { %v556_v23 = vpop.permute.xlu2 %555 }
 0x22b   : > { %v557_v50 = vrot.slane %v556_v23, 1 }
 0x22d   : > { %v559_v31 = vsel %vm558_vm5, %v556_v23, %v557_v50 }
 0x24a   : > { %v474_v55 = vpop.permute.xlu1 %473 }
 0x24b   : > { %v475_v22 = vrot.slane %v474_v55, 1 }
 0x24d   : > { %v477_v26 = vsel %vm476_vm0, %v474_v55, %v475_v22  ;;  %v924_v55 = vld [vmem:[%s1259_s6 + $0x60] sm:$0xff] }
 0x24e   : > { %v479_v34 = vadd.f32 %v477_v26, %v396_v27  ;;  %v927_v27 = vld [vmem:[%s1259_s6 + $0x78] sm:$0xff] }
 0x250   : > { %v561_v39 = vadd.f32 %v559_v31, %v479_v34 }
 0x258   : > { %v802_v38 = vpop.permute.xlu2 %801 }
 0x259   : > { %v803_v43 = vrot.slane %v802_v38, 1 }
 0x25b   : > { %v805_v21 = vsel %vm804_vm8, %v802_v38, %v803_v43 }
 0x25d   : > { %v638_v24 = vpop.permute.xlu0 %637 }
 0x25e   : > { %v639_v32 = vrot.slane %v638_v24, 1 }
 0x260   : > { %v641_v37 = vsel %vm640_vm6, %v638_v24, %v639_v32  ;;  %v926_v24 = vld [vmem:[%s1259_s6 + $0x70] sm:$0xff] }
 0x261   : > { %v643_v49 = vadd.f32 %v641_v37, %v561_v39 }
 0x26d   : > { %v720_v28 = vpop.permute.xlu1 %719 }
 0x26e   : > { %v721_v35 = vrot.slane %v720_v28, 1 }
 0x270   : > { %v723_v42 = vsel %vm722_vm7, %v720_v28, %v721_v35 }
 0x271   : > { %v725_v44 = vadd.f32 %v723_v42, %v643_v49 }
 0x273   : > { %v807_v46 = vadd.f32 %v805_v21, %v725_v44 }
 0x281   : > { %v884_v30 = vpop.permute.xlu0 %883 }
 0x282   : > { %v885_v45 = vrot.slane %v884_v30, 1 }
 0x284   : > { %v887_v47 = vsel %vm886_vm9, %v884_v30, %v885_v45 }
 0x285   : > { %v889_v48 = vadd.f32 %v887_v47, %v807_v46 }
 0x287   : > { %v892_v52 = vadd.f32 %v891_v41, %v889_v48 }
 0x289   : > { %v1099_v53 = vmul.f32 -1.442695, %v892_v52 }
 0x28b   : > { %1143 = vpow2.f32 %v1099_v53 }
 0x291   : > { %v1144_v54 = vpop.eup %1143 }
 0x292   : > { %v896_v56 = vadd.f32 1.0, %v1144_v54 }
 0x294   : > { %1145 = vrcp.f32 %v896_v56  ;;  %v908_v61 = vand.u32 2147483648, %v896_v56  ;;  %v906_v63 = vand.u32 2147483647, %v896_v56  ;;  %vm902_vm11 = vweird.f32 %v896_v56 }
 0x296   : > { %v909_v0 = vor.u32 1.1754944e-38, %v908_v61  ;;  %vm907_vm13 = vcmp.eq.f32.partialorder %v906_v63, 8.507059e+37 }
 0x29a   : > { %v1146_v59 = vpop.eup %1145 }
 0x29b   : > { %v898_v33 = vmul.f32 %v1146_v59, %v896_v56  ;;  %vm903_vm10 = vweird.f32 %v1146_v59 }
 0x29c   : > { %vm904_vm12 = vmor %vm902_vm11, %vm903_vm10 }
 0x29d   : > { %v899_v60 = vsub.f32 1.0, %v898_v33 }
 0x29f   : > { %v900_v62 = vmul.f32 %v1146_v59, %v899_v60 }
 0x2a1   : > { %v901_v40 = vadd.f32 %v1146_v59, %v900_v62 }
 0x2a3   : > { %v905_v1 = vsel %vm904_vm12, %v1146_v59, %v901_v40 }
 0x2a4   : > { %v910_v2 = vsel %vm907_vm13, %v909_v0, %v905_v1 }
 0x2a5   : > { %v929_v3 = vperm.slane %v910_v2, 0  ;;  %v930_v4 = vperm.slane %v910_v2, 1 }
 0x2a7   : > { %v933_v57 = vmul.f32 %v1147_v5, %v929_v3  ;;  %v934_v7 = vmul.f32 %v1148_v6, %v930_v4  ;;  %v935_v9 = vmul.f32 %v1149_v8, %v929_v3  ;;  %v936_v10 = vmul.f32 %v1150_v25, %v930_v4 }
 0x2a8   : > { %v937_v12 = vmul.f32 %v1151_v36, %v929_v3  ;;  %v938_v15 = vmul.f32 %v1152_v13, %v930_v4  ;;  %v939_v17 = vmul.f32 %v1153_v16, %v929_v3  ;;  %v940_v29 = vmul.f32 %v1154_v58, %v930_v4 }
 0x2a9   : > { %949 = vst [vmem:[%s1524_s10] sm:$0xff] %v933_v57  ;;  %v941_v20 = vmul.f32 %v1155_v51, %v929_v3  ;;  %v942_v22 = vmul.f32 %v930_v4, %v921_v14  ;;  %v943_v23 = vmul.f32 %v929_v3, %v922_v18  ;;  %v944_v26 = vmul.f32 %v930_v4, %v923_v19 }
 0x2aa   : > { %950 = vst [vmem:[%s1524_s10 + $0x8] sm:$0xff] %v934_v7  ;;  %v945_v28 = vmul.f32 %v929_v3, %v924_v55  ;;  %v946_v50 = vmul.f32 %v930_v4, %v925_v11  ;;  %v947_v32 = vmul.f32 %v929_v3, %v926_v24  ;;  %v948_v34 = vmul.f32 %v930_v4, %v927_v27 }
 0x2ab   : > { %951 = vst [vmem:[%s1524_s10 + $0x10] sm:$0xff] %v935_v9 }
 0x2ac   : > { %952 = vst [vmem:[%s1524_s10 + $0x18] sm:$0xff] %v936_v10 }
 0x2ad   : > { %953 = vst [vmem:[%s1524_s10 + $0x20] sm:$0xff] %v937_v12 }
 0x2ae   : > { %954 = vst [vmem:[%s1524_s10 + $0x28] sm:$0xff] %v938_v15 }
 0x2af   : > { %955 = vst [vmem:[%s1524_s10 + $0x30] sm:$0xff] %v939_v17 }
 0x2b0   : > { %956 = vst [vmem:[%s1524_s10 + $0x38] sm:$0xff] %v940_v29 }
 0x2b1   : > { %957 = vst [vmem:[%s1524_s10 + $0x40] sm:$0xff] %v941_v20 }
 0x2b2   : > { %958 = vst [vmem:[%s1524_s10 + $0x48] sm:$0xff] %v942_v22 }
 0x2b3   : > { %959 = vst [vmem:[%s1524_s10 + $0x50] sm:$0xff] %v943_v23 }
 0x2b4   : > { %960 = vst [vmem:[%s1524_s10 + $0x58] sm:$0xff] %v944_v26 }
 0x2b5   : > { %961 = vst [vmem:[%s1524_s10 + $0x60] sm:$0xff] %v945_v28 }
 0x2b6   : > { %962 = vst [vmem:[%s1524_s10 + $0x68] sm:$0xff] %v946_v50 }
 0x2b7   : > { %963 = vst [vmem:[%s1524_s10 + $0x70] sm:$0xff] %v947_v32 }
 0x2b8   : > { %964 = vst [vmem:[%s1524_s10 + $0x78] sm:$0xff] %v948_v34 }
 0x2b9 PF: > { %s17_s20 = sadd.s32 1, %s1181_s20  }
 0x2ba   : > { %p14_p7 = scmp.ge.s32.totalorder %s17_s20, 4  }
 0x2bc   :  { %16 = sbr.rel (!%p14_p7) target bundleno = 3 (0x3), region = 81 }
 0x2c1   :  { %986 = vsyncpa [#allocation5], 1 }
 0x2c2   :  { %988 = vsyncpa [#allocation5 + $0x1], 1 }

</bundles_post_ra>
